<compile_context>
chip_gen: v7x
topology: tpu7x:2x2x1
jax: 0.10.0
libtpu: 0.0.40
codegen_flags: <defaults>
</compile_context>

<pallas_src>
import jax
import jax.numpy as jnp
from jax.experimental import pallas as pl
from jax.experimental.pallas import tpu as pltpu

NEG_SLOPE = 0.01  # PyTorch nn.LeakyReLU default negative_slope
B_TILE = 4        # images per grid step (keep even so slices stay 8-row aligned)


# --------------------------------------------------------------------------
# Fused kernel: the whole EncoderCNNCell forward for B_TILE images per step.
# --------------------------------------------------------------------------
def _encoder_cnn_kernel(x_ref,
                        s1_ref, b1_ref, c1_ref,
                        s2_ref, b2_ref, c2_ref,
                        s3_ref, b3_ref, c3_ref,
                        o_ref):
    def conv_lrelu(x2, s_ref, b_ref, c_ref):
        # x2    : (Bt*Hin, Win*Cin)                activations, rows = (image, row)
        # s_ref : (KH*Bt*Hout, Bt*Hin)             stacked, batch-block-diag selection
        # b_ref : (KH, Win*Cin, Wout*Cout)         conv weights as block-banded mats
        # c_ref : (1, Wout*Cout)                   bias row
        kh_total = b_ref.shape[0]
        rows_out = s_ref.shape[0] // kh_total      # Bt*Hout (static)

        # One consolidated selection matmul for all KH taps (M = KH*Bt*Hout).
        r = jnp.dot(s_ref[...], x2, preferred_element_type=jnp.float32)

        # KH accumulate matmuls on static, sublane-aligned slices of r.
        acc = jnp.dot(r[0:rows_out, :], b_ref[0],
                      preferred_element_type=jnp.float32)
        for kh in range(1, kh_total):
            acc = acc + jnp.dot(r[kh * rows_out:(kh + 1) * rows_out, :],
                                b_ref[kh],
                                preferred_element_type=jnp.float32)
        y = acc + c_ref[...]
        return jnp.where(y >= 0.0, y, NEG_SLOPE * y)

    x = x_ref[...]                                   # (Bt*16, 16); Cin == 1
    a1 = conv_lrelu(x, s1_ref, b1_ref, c1_ref)       # (Bt*16, 16*16)
    a2 = conv_lrelu(a1, s2_ref, b2_ref, c2_ref)      # (Bt*8,  8*32)
    a3 = conv_lrelu(a2, s3_ref, b3_ref, c3_ref)      # (Bt*4,  4*64)
    o_ref[...] = a3.astype(o_ref.dtype)              # lane-dense 256-wide store


# --------------------------------------------------------------------------
# One-time parameter preprocessing (plain JAX, tiny arrays).
# Folds zero-padding + stride + tap selection + batch-tiling into S/B matrices.
# --------------------------------------------------------------------------
def precompute_fused_params(params, in_hw, b_tile=B_TILE):
    H, W = in_hw
    eye_b = jnp.eye(b_tile, dtype=jnp.float32)
    layers = []
    for (w_hwio, b, s, p) in params:
        KH, KW, Cin, Cout = w_hwio.shape
        Ho = (H + 2 * p - KH) // s + 1
        Wo = (W + 2 * p - KW) // s + 1

        # Row selection, stacked over kh and block-diagonal over the batch tile:
        #   S_stack[kh*Bt*Ho + b*Ho + oh, b'*H + h] = [b'==b][h == s*oh + kh - p]
        # Out-of-range rows select nothing -> exact zero padding.
        oh = jnp.arange(Ho)[:, None]
        hh = jnp.arange(H)[None, :]
        s_blocks = []
        for kh in range(KH):
            s_small = (hh == s * oh + (kh - p)).astype(jnp.float32)   # (Ho, H)
            s_blocks.append(jnp.kron(eye_b, s_small))                 # (Bt*Ho, Bt*H)
        S_stack = jnp.concatenate(s_blocks, axis=0)      # (KH*Bt*Ho, Bt*H)

        # Column/weight matrices: B[kh][(w*Cin+ci), (ow*Cout+co)]
        #   = sum_kw [w == s*ow + kw - p] * w_hwio[kh, kw, ci, co]
        ww = jnp.arange(W)[:, None]
        ow = jnp.arange(Wo)[None, :]
        Bm = []
        for kh in range(KH):
            acc = jnp.zeros((W * Cin, Wo * Cout), jnp.float32)
            for kw in range(KW):
                sel = (ww == s * ow + (kw - p)).astype(jnp.float32)   # (W, Wo)
                acc = acc + jnp.kron(sel, w_hwio[kh, kw])
            Bm.append(acc)
        Bm = jnp.stack(Bm)                               # (KH, W*Cin, Wo*Cout)

        bias_row = jnp.tile(b, (Wo,))[None, :]           # (1, Wo*Cout)
        layers.append((S_stack, Bm, bias_row))
        H, W = Ho, Wo

    out_meta = (H, W, params[-1][0].shape[-1], b_tile)   # (Ho_f, Wo_f, Cout_f, Bt)
    return layers, out_meta


# --------------------------------------------------------------------------
# Wrapper
# --------------------------------------------------------------------------
def encoder_cnn_cell_forward(x_nchw, packed, *, return_nchw=True):
    """Pallas implementation of EncoderCNNCell.forward (input NCHW)."""
    layers, (Ho_f, Wo_f, Cout_f, Bt) = packed
    N, Cin, H, W = x_nchw.shape
    assert Cin == 1, "EncoderCNNCell expects a single-channel input"

    # Cin==1: NCHW -> (N,H,W) is a pure reshape; pad batch to a B_TILE multiple.
    Npad = ((N + Bt - 1) // Bt) * Bt
    x_img = x_nchw.reshape(N, H, W)
    if Npad != N:
        x_img = jnp.concatenate(
            [x_img, jnp.zeros((Npad - N, H, W), x_img.dtype)], axis=0)
    x_rows = x_img.reshape(Npad * H, W)                  # rows = (image, row)

    (S1, B1, c1), (S2, B2, c2), (S3, B3, c3) = layers

    out = pl.pallas_call(
        _encoder_cnn_kernel,
        out_shape=jax.ShapeDtypeStruct((Npad * Ho_f, Wo_f * Cout_f), jnp.float32),
        grid_spec=pltpu.PrefetchScalarGridSpec(
            num_scalar_prefetch=0,
            grid=(Npad // Bt,),
            in_specs=[
                pl.BlockSpec((Bt * H, W), lambda n: (n, 0)),
                # Constants: constant index_map -> VMEM-resident across all steps.
                pl.BlockSpec(S1.shape, lambda n: (0, 0)),
                pl.BlockSpec(B1.shape, lambda n: (0, 0, 0)),
                pl.BlockSpec(c1.shape, lambda n: (0, 0)),
                pl.BlockSpec(S2.shape, lambda n: (0, 0)),
                pl.BlockSpec(B2.shape, lambda n: (0, 0, 0)),
                pl.BlockSpec(c2.shape, lambda n: (0, 0)),
                pl.BlockSpec(S3.shape, lambda n: (0, 0)),
                pl.BlockSpec(B3.shape, lambda n: (0, 0, 0)),
                pl.BlockSpec(c3.shape, lambda n: (0, 0)),
            ],
            out_specs=pl.BlockSpec((Bt * Ho_f, Wo_f * Cout_f), lambda n: (n, 0)),
        ),
        compiler_params=pltpu.CompilerParams(
            dimension_semantics=("parallel",)),
    )(x_rows, S1, B1, c1, S2, B2, c2, S3, B3, c3)

    out = out.reshape(Npad, Ho_f, Wo_f, Cout_f)[:N]      # NHWC, lane-dense
    if return_nchw:
        # Tiny wrapper-side permutation to honor the PyTorch NCHW contract.
        out = jnp.transpose(out, (0, 3, 1, 2))
    return out


# --------------------------------------------------------------------------
# Parameters & pure-JAX reference
# --------------------------------------------------------------------------
def init_params(key):
    """Deterministic synthetic parameters. HWIO weights, one (w, b, stride, pad) per layer."""
    specs = [
        # (KH, KW, Cin, Cout, stride, pad)
        (5, 5, 1, 16, 1, 2),
        (3, 3, 16, 32, 2, 1),
        (3, 3, 32, 64, 2, 1),
    ]
    params = []
    for li, (kh, kw, cin, cout, s, p) in enumerate(specs):
        kw_key, kb_key = jax.random.split(jax.random.fold_in(key, li))
        fan_in = kh * kw * cin
        w = jax.random.normal(kw_key, (kh, kw, cin, cout), jnp.float32) / jnp.sqrt(fan_in)
        b = 0.1 * jax.random.normal(kb_key, (cout,), jnp.float32)
        params.append((w, b, s, p))
    return params


def encoder_cnn_cell_reference(x_nchw, params):
    """Pure-JAX reference (lax conv) for validation."""
    x = x_nchw
    for (w, b, s, p) in params:
        x = jax.lax.conv_general_dilated(
            x, w, window_strides=(s, s), padding=[(p, p), (p, p)],
            dimension_numbers=("NCHW", "HWIO", "NCHW"))
        x = x + b.reshape(1, -1, 1, 1)
        x = jnp.where(x >= 0, x, NEG_SLOPE * x)
    return x


if __name__ == "__main__":
    key = jax.random.PRNGKey(0)
    xk, pk = jax.random.split(key)

    # EncoderCNNCell expects a single-channel NCHW image.
    N, H, W = 8, 16, 16
    x = jax.random.normal(xk, (N, 1, H, W), jnp.float32)
    params = init_params(pk)
    packed = precompute_fused_params(params, in_hw=(H, W), b_tile=B_TILE)

    out = encoder_cnn_cell_forward(x, packed)
    out = jax.block_until_ready(out)

    assert out.shape == (N, 64, 4, 4), out.shape

    ref = jax.block_until_ready(encoder_cnn_cell_reference(x, params))
    assert jnp.allclose(out, ref, atol=1e-4, rtol=1e-4), \
        float(jnp.max(jnp.abs(out - ref)))

    print("KERNEL_OK")
</pallas_src>

<mosaic_0001>
module attributes {stable_mosaic.version = 11 : i64} {
  func.func @_encoder_cnn_kernel(%arg0: i32, %arg1: memref<64x16xf32, #tpu.memory_space<vmem>>, %arg2: memref<320x64xf32, #tpu.memory_space<vmem>>, %arg3: memref<5x16x256xf32, #tpu.memory_space<vmem>>, %arg4: memref<1x256xf32, #tpu.memory_space<vmem>>, %arg5: memref<96x64xf32, #tpu.memory_space<vmem>>, %arg6: memref<3x256x256xf32, #tpu.memory_space<vmem>>, %arg7: memref<1x256xf32, #tpu.memory_space<vmem>>, %arg8: memref<48x32xf32, #tpu.memory_space<vmem>>, %arg9: memref<3x256x256xf32, #tpu.memory_space<vmem>>, %arg10: memref<1x256xf32, #tpu.memory_space<vmem>>, %arg11: memref<16x256xf32, #tpu.memory_space<vmem>>) attributes {dimension_semantics = [#tpu.dimension_semantics<parallel>], iteration_bounds = array<i64: 2>, scalar_prefetch = 0 : i64, scratch_operands = 0 : i64, tpu.core_type = #tpu.core_type<tc>, window_params = [{transform_indices = @transform_0, window_bounds = array<i64: 64, 16>}, {pipeline_mode = #tpu.pipeline_mode<synchronous>, transform_indices = @transform_1, window_bounds = array<i64: 320, 64>}, {pipeline_mode = #tpu.pipeline_mode<synchronous>, transform_indices = @transform_2, window_bounds = array<i64: 5, 16, 256>}, {pipeline_mode = #tpu.pipeline_mode<synchronous>, transform_indices = @transform_3, window_bounds = array<i64: 1, 256>}, {pipeline_mode = #tpu.pipeline_mode<synchronous>, transform_indices = @transform_4, window_bounds = array<i64: 96, 64>}, {pipeline_mode = #tpu.pipeline_mode<synchronous>, transform_indices = @transform_5, window_bounds = array<i64: 3, 256, 256>}, {pipeline_mode = #tpu.pipeline_mode<synchronous>, transform_indices = @transform_6, window_bounds = array<i64: 1, 256>}, {pipeline_mode = #tpu.pipeline_mode<synchronous>, transform_indices = @transform_7, window_bounds = array<i64: 48, 32>}, {pipeline_mode = #tpu.pipeline_mode<synchronous>, transform_indices = @transform_8, window_bounds = array<i64: 3, 256, 256>}, {pipeline_mode = #tpu.pipeline_mode<synchronous>, transform_indices = @transform_9, window_bounds = array<i64: 1, 256>}, {transform_indices = @transform_10, window_bounds = array<i64: 16, 256>}]} {
    %c0 = arith.constant 0 : index
    %c0_0 = arith.constant 0 : index
    %0 = vector.load %arg1[%c0, %c0_0] : memref<64x16xf32, #tpu.memory_space<vmem>>, vector<64x16xf32>
    %c0_1 = arith.constant 0 : index
    %c0_2 = arith.constant 0 : index
    %1 = vector.load %arg2[%c0_1, %c0_2] : memref<320x64xf32, #tpu.memory_space<vmem>>, vector<320x64xf32>
    %cst = arith.constant dense<0.000000e+00> : vector<320x16xf32>
    %2 = tpu.matmul %1, %0, %cst {dimension_numbers = #tpu.dot_dimension_numbers<[1], [0], [0], [1], [0, 0, 1, 1], [], []>} : vector<320x64xf32>, vector<64x16xf32>, vector<320x16xf32> -> vector<320x16xf32>
    %3 = vector.extract_strided_slice %2 {offsets = [0, 0], sizes = [64, 16], strides = [1, 1]} : vector<320x16xf32> to vector<64x16xf32>
    %c0_3 = arith.constant 0 : index
    %c0_4 = arith.constant 0 : index
    %c0_5 = arith.constant 0 : index
    %4 = vector.load %arg3[%c0_3, %c0_4, %c0_5] : memref<5x16x256xf32, #tpu.memory_space<vmem>>, vector<1x16x256xf32>
    %5 = vector.shape_cast %4 : vector<1x16x256xf32> to vector<16x256xf32>
    %cst_6 = arith.constant dense<0.000000e+00> : vector<64x256xf32>
    %6 = tpu.matmul %3, %5, %cst_6 {dimension_numbers = #tpu.dot_dimension_numbers<[1], [0], [0], [1], [0, 0, 1, 1], [], []>} : vector<64x16xf32>, vector<16x256xf32>, vector<64x256xf32> -> vector<64x256xf32>
    %7 = vector.extract_strided_slice %2 {offsets = [64, 0], sizes = [64, 16], strides = [1, 1]} : vector<320x16xf32> to vector<64x16xf32>
    %c1 = arith.constant 1 : index
    %c0_7 = arith.constant 0 : index
    %c0_8 = arith.constant 0 : index
    %8 = vector.load %arg3[%c1, %c0_7, %c0_8] : memref<5x16x256xf32, #tpu.memory_space<vmem>>, vector<1x16x256xf32>
    %9 = vector.shape_cast %8 : vector<1x16x256xf32> to vector<16x256xf32>
    %cst_9 = arith.constant dense<0.000000e+00> : vector<64x256xf32>
    %10 = tpu.matmul %7, %9, %cst_9 {dimension_numbers = #tpu.dot_dimension_numbers<[1], [0], [0], [1], [0, 0, 1, 1], [], []>} : vector<64x16xf32>, vector<16x256xf32>, vector<64x256xf32> -> vector<64x256xf32>
    %11 = arith.addf %6, %10 : vector<64x256xf32>
    %12 = vector.extract_strided_slice %2 {offsets = [128, 0], sizes = [64, 16], strides = [1, 1]} : vector<320x16xf32> to vector<64x16xf32>
    %c2 = arith.constant 2 : index
    %c0_10 = arith.constant 0 : index
    %c0_11 = arith.constant 0 : index
    %13 = vector.load %arg3[%c2, %c0_10, %c0_11] : memref<5x16x256xf32, #tpu.memory_space<vmem>>, vector<1x16x256xf32>
    %14 = vector.shape_cast %13 : vector<1x16x256xf32> to vector<16x256xf32>
    %cst_12 = arith.constant dense<0.000000e+00> : vector<64x256xf32>
    %15 = tpu.matmul %12, %14, %cst_12 {dimension_numbers = #tpu.dot_dimension_numbers<[1], [0], [0], [1], [0, 0, 1, 1], [], []>} : vector<64x16xf32>, vector<16x256xf32>, vector<64x256xf32> -> vector<64x256xf32>
    %16 = arith.addf %11, %15 : vector<64x256xf32>
    %17 = vector.extract_strided_slice %2 {offsets = [192, 0], sizes = [64, 16], strides = [1, 1]} : vector<320x16xf32> to vector<64x16xf32>
    %c3 = arith.constant 3 : index
    %c0_13 = arith.constant 0 : index
    %c0_14 = arith.constant 0 : index
    %18 = vector.load %arg3[%c3, %c0_13, %c0_14] : memref<5x16x256xf32, #tpu.memory_space<vmem>>, vector<1x16x256xf32>
    %19 = vector.shape_cast %18 : vector<1x16x256xf32> to vector<16x256xf32>
    %cst_15 = arith.constant dense<0.000000e+00> : vector<64x256xf32>
    %20 = tpu.matmul %17, %19, %cst_15 {dimension_numbers = #tpu.dot_dimension_numbers<[1], [0], [0], [1], [0, 0, 1, 1], [], []>} : vector<64x16xf32>, vector<16x256xf32>, vector<64x256xf32> -> vector<64x256xf32>
    %21 = arith.addf %16, %20 : vector<64x256xf32>
    %22 = vector.extract_strided_slice %2 {offsets = [256, 0], sizes = [64, 16], strides = [1, 1]} : vector<320x16xf32> to vector<64x16xf32>
    %c4 = arith.constant 4 : index
    %c0_16 = arith.constant 0 : index
    %c0_17 = arith.constant 0 : index
    %23 = vector.load %arg3[%c4, %c0_16, %c0_17] : memref<5x16x256xf32, #tpu.memory_space<vmem>>, vector<1x16x256xf32>
    %24 = vector.shape_cast %23 : vector<1x16x256xf32> to vector<16x256xf32>
    %cst_18 = arith.constant dense<0.000000e+00> : vector<64x256xf32>
    %25 = tpu.matmul %22, %24, %cst_18 {dimension_numbers = #tpu.dot_dimension_numbers<[1], [0], [0], [1], [0, 0, 1, 1], [], []>} : vector<64x16xf32>, vector<16x256xf32>, vector<64x256xf32> -> vector<64x256xf32>
    %26 = arith.addf %21, %25 : vector<64x256xf32>
    %c0_19 = arith.constant 0 : index
    %c0_20 = arith.constant 0 : index
    %27 = vector.load %arg4[%c0_19, %c0_20] : memref<1x256xf32, #tpu.memory_space<vmem>>, vector<1x256xf32>
    %28 = vector.broadcast %27 : vector<1x256xf32> to vector<64x256xf32>
    %29 = arith.addf %26, %28 : vector<64x256xf32>
    %cst_21 = arith.constant 0.000000e+00 : f32
    %30 = vector.broadcast %cst_21 : f32 to vector<64x256xf32>
    %31 = arith.cmpf oge, %29, %30 : vector<64x256xf32>
    %cst_22 = arith.constant 0.00999999977 : f32
    %32 = vector.broadcast %cst_22 : f32 to vector<64x256xf32>
    %33 = arith.mulf %32, %29 : vector<64x256xf32>
    %34 = arith.select %31, %29, %33 : vector<64x256xi1>, vector<64x256xf32>
    %c0_23 = arith.constant 0 : index
    %c0_24 = arith.constant 0 : index
    %35 = vector.load %arg5[%c0_23, %c0_24] : memref<96x64xf32, #tpu.memory_space<vmem>>, vector<96x64xf32>
    %cst_25 = arith.constant dense<0.000000e+00> : vector<96x256xf32>
    %36 = tpu.matmul %35, %34, %cst_25 {dimension_numbers = #tpu.dot_dimension_numbers<[1], [0], [0], [1], [0, 0, 1, 1], [], []>} : vector<96x64xf32>, vector<64x256xf32>, vector<96x256xf32> -> vector<96x256xf32>
    %37 = vector.extract_strided_slice %36 {offsets = [0, 0], sizes = [32, 256], strides = [1, 1]} : vector<96x256xf32> to vector<32x256xf32>
    %c0_26 = arith.constant 0 : index
    %c0_27 = arith.constant 0 : index
    %c0_28 = arith.constant 0 : index
    %38 = vector.load %arg6[%c0_26, %c0_27, %c0_28] : memref<3x256x256xf32, #tpu.memory_space<vmem>>, vector<1x256x256xf32>
    %39 = vector.shape_cast %38 : vector<1x256x256xf32> to vector<256x256xf32>
    %cst_29 = arith.constant dense<0.000000e+00> : vector<32x256xf32>
    %40 = tpu.matmul %37, %39, %cst_29 {dimension_numbers = #tpu.dot_dimension_numbers<[1], [0], [0], [1], [0, 0, 1, 1], [], []>} : vector<32x256xf32>, vector<256x256xf32>, vector<32x256xf32> -> vector<32x256xf32>
    %41 = vector.extract_strided_slice %36 {offsets = [32, 0], sizes = [32, 256], strides = [1, 1]} : vector<96x256xf32> to vector<32x256xf32>
    %c1_30 = arith.constant 1 : index
    %c0_31 = arith.constant 0 : index
    %c0_32 = arith.constant 0 : index
    %42 = vector.load %arg6[%c1_30, %c0_31, %c0_32] : memref<3x256x256xf32, #tpu.memory_space<vmem>>, vector<1x256x256xf32>
    %43 = vector.shape_cast %42 : vector<1x256x256xf32> to vector<256x256xf32>
    %cst_33 = arith.constant dense<0.000000e+00> : vector<32x256xf32>
    %44 = tpu.matmul %41, %43, %cst_33 {dimension_numbers = #tpu.dot_dimension_numbers<[1], [0], [0], [1], [0, 0, 1, 1], [], []>} : vector<32x256xf32>, vector<256x256xf32>, vector<32x256xf32> -> vector<32x256xf32>
    %45 = arith.addf %40, %44 : vector<32x256xf32>
    %46 = vector.extract_strided_slice %36 {offsets = [64, 0], sizes = [32, 256], strides = [1, 1]} : vector<96x256xf32> to vector<32x256xf32>
    %c2_34 = arith.constant 2 : index
    %c0_35 = arith.constant 0 : index
    %c0_36 = arith.constant 0 : index
    %47 = vector.load %arg6[%c2_34, %c0_35, %c0_36] : memref<3x256x256xf32, #tpu.memory_space<vmem>>, vector<1x256x256xf32>
    %48 = vector.shape_cast %47 : vector<1x256x256xf32> to vector<256x256xf32>
    %cst_37 = arith.constant dense<0.000000e+00> : vector<32x256xf32>
    %49 = tpu.matmul %46, %48, %cst_37 {dimension_numbers = #tpu.dot_dimension_numbers<[1], [0], [0], [1], [0, 0, 1, 1], [], []>} : vector<32x256xf32>, vector<256x256xf32>, vector<32x256xf32> -> vector<32x256xf32>
    %50 = arith.addf %45, %49 : vector<32x256xf32>
    %c0_38 = arith.constant 0 : index
    %c0_39 = arith.constant 0 : index
    %51 = vector.load %arg7[%c0_38, %c0_39] : memref<1x256xf32, #tpu.memory_space<vmem>>, vector<1x256xf32>
    %52 = vector.broadcast %51 : vector<1x256xf32> to vector<32x256xf32>
    %53 = arith.addf %50, %52 : vector<32x256xf32>
    %cst_40 = arith.constant 0.000000e+00 : f32
    %54 = vector.broadcast %cst_40 : f32 to vector<32x256xf32>
    %55 = arith.cmpf oge, %53, %54 : vector<32x256xf32>
    %cst_41 = arith.constant 0.00999999977 : f32
    %56 = vector.broadcast %cst_41 : f32 to vector<32x256xf32>
    %57 = arith.mulf %56, %53 : vector<32x256xf32>
    %58 = arith.select %55, %53, %57 : vector<32x256xi1>, vector<32x256xf32>
    %c0_42 = arith.constant 0 : index
    %c0_43 = arith.constant 0 : index
    %59 = vector.load %arg8[%c0_42, %c0_43] : memref<48x32xf32, #tpu.memory_space<vmem>>, vector<48x32xf32>
    %cst_44 = arith.constant dense<0.000000e+00> : vector<48x256xf32>
    %60 = tpu.matmul %59, %58, %cst_44 {dimension_numbers = #tpu.dot_dimension_numbers<[1], [0], [0], [1], [0, 0, 1, 1], [], []>} : vector<48x32xf32>, vector<32x256xf32>, vector<48x256xf32> -> vector<48x256xf32>
    %61 = vector.extract_strided_slice %60 {offsets = [0, 0], sizes = [16, 256], strides = [1, 1]} : vector<48x256xf32> to vector<16x256xf32>
    %c0_45 = arith.constant 0 : index
    %c0_46 = arith.constant 0 : index
    %c0_47 = arith.constant 0 : index
    %62 = vector.load %arg9[%c0_45, %c0_46, %c0_47] : memref<3x256x256xf32, #tpu.memory_space<vmem>>, vector<1x256x256xf32>
    %63 = vector.shape_cast %62 : vector<1x256x256xf32> to vector<256x256xf32>
    %cst_48 = arith.constant dense<0.000000e+00> : vector<16x256xf32>
    %64 = tpu.matmul %61, %63, %cst_48 {dimension_numbers = #tpu.dot_dimension_numbers<[1], [0], [0], [1], [0, 0, 1, 1], [], []>} : vector<16x256xf32>, vector<256x256xf32>, vector<16x256xf32> -> vector<16x256xf32>
    %65 = vector.extract_strided_slice %60 {offsets = [16, 0], sizes = [16, 256], strides = [1, 1]} : vector<48x256xf32> to vector<16x256xf32>
    %c1_49 = arith.constant 1 : index
    %c0_50 = arith.constant 0 : index
    %c0_51 = arith.constant 0 : index
    %66 = vector.load %arg9[%c1_49, %c0_50, %c0_51] : memref<3x256x256xf32, #tpu.memory_space<vmem>>, vector<1x256x256xf32>
    %67 = vector.shape_cast %66 : vector<1x256x256xf32> to vector<256x256xf32>
    %cst_52 = arith.constant dense<0.000000e+00> : vector<16x256xf32>
    %68 = tpu.matmul %65, %67, %cst_52 {dimension_numbers = #tpu.dot_dimension_numbers<[1], [0], [0], [1], [0, 0, 1, 1], [], []>} : vector<16x256xf32>, vector<256x256xf32>, vector<16x256xf32> -> vector<16x256xf32>
    %69 = arith.addf %64, %68 : vector<16x256xf32>
    %70 = vector.extract_strided_slice %60 {offsets = [32, 0], sizes = [16, 256], strides = [1, 1]} : vector<48x256xf32> to vector<16x256xf32>
    %c2_53 = arith.constant 2 : index
    %c0_54 = arith.constant 0 : index
    %c0_55 = arith.constant 0 : index
    %71 = vector.load %arg9[%c2_53, %c0_54, %c0_55] : memref<3x256x256xf32, #tpu.memory_space<vmem>>, vector<1x256x256xf32>
    %72 = vector.shape_cast %71 : vector<1x256x256xf32> to vector<256x256xf32>
    %cst_56 = arith.constant dense<0.000000e+00> : vector<16x256xf32>
    %73 = tpu.matmul %70, %72, %cst_56 {dimension_numbers = #tpu.dot_dimension_numbers<[1], [0], [0], [1], [0, 0, 1, 1], [], []>} : vector<16x256xf32>, vector<256x256xf32>, vector<16x256xf32> -> vector<16x256xf32>
    %74 = arith.addf %69, %73 : vector<16x256xf32>
    %c0_57 = arith.constant 0 : index
    %c0_58 = arith.constant 0 : index
    %75 = vector.load %arg10[%c0_57, %c0_58] : memref<1x256xf32, #tpu.memory_space<vmem>>, vector<1x256xf32>
    %76 = vector.broadcast %75 : vector<1x256xf32> to vector<16x256xf32>
    %77 = arith.addf %74, %76 : vector<16x256xf32>
    %cst_59 = arith.constant 0.000000e+00 : f32
    %78 = vector.broadcast %cst_59 : f32 to vector<16x256xf32>
    %79 = arith.cmpf oge, %77, %78 : vector<16x256xf32>
    %cst_60 = arith.constant 0.00999999977 : f32
    %80 = vector.broadcast %cst_60 : f32 to vector<16x256xf32>
    %81 = arith.mulf %80, %77 : vector<16x256xf32>
    %82 = arith.select %79, %77, %81 : vector<16x256xi1>, vector<16x256xf32>
    %c0_61 = arith.constant 0 : index
    %c0_62 = arith.constant 0 : index
    %83 = vector.load %arg11[%c0_61, %c0_62] : memref<16x256xf32, #tpu.memory_space<vmem>>, vector<16x256xf32>
    tpu.vector_store %arg11[%c0_61, %c0_62], %82 {strides = array<i32>} : memref<16x256xf32, #tpu.memory_space<vmem>>, vector<16x256xf32>,
    return
  }
  func.func @transform_0(%arg0: i32) -> (i32, i32) {
    %c0_i32 = arith.constant 0 : i32
    %c0_i32_0 = arith.constant 0 : i32
    return %arg0, %c0_i32 : i32, i32
  }
  func.func @transform_1(%arg0: i32) -> (i32, i32) {
    %c0_i32 = arith.constant 0 : i32
    %c0_i32_0 = arith.constant 0 : i32
    %c0_i32_1 = arith.constant 0 : i32
    return %c0_i32, %c0_i32_0 : i32, i32
  }
  func.func @transform_2(%arg0: i32) -> (i32, i32, i32) {
    %c0_i32 = arith.constant 0 : i32
    %c0_i32_0 = arith.constant 0 : i32
    %c0_i32_1 = arith.constant 0 : i32
    %c0_i32_2 = arith.constant 0 : i32
    return %c0_i32, %c0_i32_0, %c0_i32_1 : i32, i32, i32
  }
  func.func @transform_3(%arg0: i32) -> (i32, i32) {
    %c0_i32 = arith.constant 0 : i32
    %c0_i32_0 = arith.constant 0 : i32
    %c0_i32_1 = arith.constant 0 : i32
    return %c0_i32, %c0_i32_0 : i32, i32
  }
  func.func @transform_4(%arg0: i32) -> (i32, i32) {
    %c0_i32 = arith.constant 0 : i32
    %c0_i32_0 = arith.constant 0 : i32
    %c0_i32_1 = arith.constant 0 : i32
    return %c0_i32, %c0_i32_0 : i32, i32
  }
  func.func @transform_5(%arg0: i32) -> (i32, i32, i32) {
    %c0_i32 = arith.constant 0 : i32
    %c0_i32_0 = arith.constant 0 : i32
    %c0_i32_1 = arith.constant 0 : i32
    %c0_i32_2 = arith.constant 0 : i32
    return %c0_i32, %c0_i32_0, %c0_i32_1 : i32, i32, i32
  }
  func.func @transform_6(%arg0: i32) -> (i32, i32) {
    %c0_i32 = arith.constant 0 : i32
    %c0_i32_0 = arith.constant 0 : i32
    %c0_i32_1 = arith.constant 0 : i32
    return %c0_i32, %c0_i32_0 : i32, i32
  }
  func.func @transform_7(%arg0: i32) -> (i32, i32) {
    %c0_i32 = arith.constant 0 : i32
    %c0_i32_0 = arith.constant 0 : i32
    %c0_i32_1 = arith.constant 0 : i32
    return %c0_i32, %c0_i32_0 : i32, i32
  }
  func.func @transform_8(%arg0: i32) -> (i32, i32, i32) {
    %c0_i32 = arith.constant 0 : i32
    %c0_i32_0 = arith.constant 0 : i32
    %c0_i32_1 = arith.constant 0 : i32
    %c0_i32_2 = arith.constant 0 : i32
    return %c0_i32, %c0_i32_0, %c0_i32_1 : i32, i32, i32
  }
  func.func @transform_9(%arg0: i32) -> (i32, i32) {
    %c0_i32 = arith.constant 0 : i32
    %c0_i32_0 = arith.constant 0 : i32
    %c0_i32_1 = arith.constant 0 : i32
    return %c0_i32, %c0_i32_0 : i32, i32
  }
  func.func @transform_10(%arg0: i32) -> (i32, i32) {
    %c0_i32 = arith.constant 0 : i32
    %c0_i32_0 = arith.constant 0 : i32
    return %arg0, %c0_i32 : i32, i32
  }
}

</mosaic_0001>

<bundles_post_ra>
// kernel: tpu_custom_call.1
= control target key start
LH: loop header
LB: loop body
LE: loop exit
PB: predicated region body
PF: predicated region fallthrough
CT: control target
= control target key end

     0   :  { %15 = vsyncpa [#allocation3], 0  ;;  %s4803_s0 = inlined_call_operand.vmem [shape: f32[128,16], index: 0, kind: input, shape index: {}]   ;;  %s4804_s1 = inlined_call_operand.vmem [shape: f32[320,64], index: 1, kind: input, shape index: {}]   ;;  %s4805_s2 = inlined_call_operand.vmem [shape: f32[5,16,256], index: 2, kind: input, shape index: {}]   ;;  %s4806_s3 = inlined_call_operand.vmem [shape: f32[1,256], index: 3, kind: input, shape index: {}]   ;;  %s4807_s4 = inlined_call_operand.vmem [shape: f32[96,64], index: 4, kind: input, shape index: {}]   ;;  %s4808_s5 = inlined_call_operand.hbm [shape: f32[3,256,256], index: 5, kind: input, shape index: {}]   ;;  %s4809_s6 = inlined_call_operand.vmem [shape: f32[1,256], index: 6, kind: input, shape index: {}]   ;;  %s4810_s7 = inlined_call_operand.vmem [shape: f32[48,32], index: 7, kind: input, shape index: {}]   ;;  %s4811_s8 = inlined_call_operand.hbm [shape: f32[3,256,256], index: 8, kind: input, shape index: {}]   ;;  %s4812_s9 = inlined_call_operand.vmem [shape: f32[1,256], index: 9, kind: input, shape index: {}]   ;;  %s4813_s10 = inlined_call_operand.hbm [shape: f32[32,256], index: 10, kind: output, shape index: {}]  }
   0x1   :  { %16 = vsyncpa [#allocation6], 0 }
   0x2   :  { %17 = vsyncpa [#allocation4], 0 }
   0x3   :  { %19 = vsyncpa [#allocation4 + $0x1], 0  ;;  %s4088_s13 = smov 0   ;;  %s4090_s14 = smov 0  }
   0x4   :  { %s4092_s15 = smov 0   ;;  %s4094_s16 = smov 0  }
   0x5 LB: > { %4821 = sst [smem:[#allocation11_spill]] %s4019_s15  ;;  %s4109_s17 = sadd.s32 4294967295, %s4023_s16   ;;  %s4023_s16 = sphi %s4094_s16, %s4837_s16   ;;  %s4019_s15 = sphi %s4092_s15, %s4839_s15   ;;  %s4015_s14 = sphi %s4090_s14, %s4841_s14   ;;  %s4011_s13 = sphi %s4088_s13, %s4840_s13  }
   0x6   : > { %s3043_s18 = sadd.s32 4294967294, %s4023_s16   ;;  %s4113_s19 = sadd.s32 1, %s4023_s16  }
   0x7   : > { %4822 = sst [smem:[#allocation12_spill]] %s4113_s19  ;;  %s247_s20 = sadd.s32 1, %s4019_s15 }
   0x8   : > { %s244_s21 = ssub.s32 %s4023_s16, %s4113_s19  ;;  %p257_p0 = scmp.ne.s32.totalorder %s4019_s15, %s4015_s14 }
   0x9   : > { %p245_p1 = scmp.eq.s32.totalorder %s244_s21, 0  ;;  %p258_p2 = scmp.eq.s32.totalorder %s4109_s17, 1 }
   0xa   : > { %p263_p3 = scmp.ne.s32.totalorder %s4015_s14, %s4011_s13  ;;  %p264_p4 = scmp.eq.s32.totalorder %s3043_s18, 1 }
   0xb   : > { %s4124_s22 = scalar_select %p245_p1, %s4019_s15, %s247_s20  }
   0xc   : > { %p4126_p5 = por %p258_p2, %p257_p0  ;;  %p4130_p6 = por %p264_p4, %p263_p3 }
   0xd   : > { %4823 = sst [smem:[#allocation13_spill]] %s4124_s22  ;;  %p3044_p7 = scmp.ge.s32.totalorder %s4023_s16, 1 }
   0xe   : > { %s4824_s23 = scalar_select %p4126_p5, 1, 0 }
   0xf   : > { %s4825_s24 = scalar_select %p4130_p6, 1, 0 }
  0x10   : > { %p271_p8 = scmp.lt.s32.totalorder %s4023_s16, 3  ;;  %p4814_p9 = scmp.eq.s32.totalorder %s4109_s17, 0 }
  0x11   : > { %4826 = sst [smem:[#allocation14_spill]] %s4825_s24  ;;  %s4025_s26 = smov [#allocation2]  }
  0x12   : > { %p4137_p10 = pnand %p3044_p7, %p271_p8  ;;  %s295_s27 = sshll.u32 %s4025_s26, 4  ;;  %s296_s27 = int_to_ptr.vmem [resolvable:$true] %s295_s27 }
  0x13   : > { %s4026_s29 = smov [#allocation5]   ;;  %s3897_s18 = scalar_lea.hbm %s4808_s5, 24576 }
  0x14   : > { %s4827_s25 = scalar_select %p4137_p10, 1, 0 }
  0x15   : > { %p3842_p11 = pneg %p4137_p10  ;;  %s314_s30 = sshll.u32 %s4026_s29, 4  ;;  %s4149_s30 = int_to_ptr.vmem [resolvable:$true] %s314_s30 }
  0x16   : > { %p3898_p13 = scmp.ne.s32.totalorder %s4808_s5, %s3897_s18  ;;  %p3904_p3 = scmp.lt.u32.totalorder %s3897_s18, %s4808_s5 }
  0x17   : > { %p4145_p12 = pnand %p4814_p9, %p3842_p11 }
  0x19   : > { %p3899_p0 = pneg %p4145_p12 }
  0x1b   : > { %p3900_p1 = pnand %p3899_p0, %p3898_p13 }
  0x1d   : > { %p3901_p2 = pneg %p3900_p1 }
  0x1f   : > { %p3906_p4 = pnand %p3904_p3, %p3901_p2 }
  0x21   : > { %3909 = shalt.err (!%p3906_p4)
}
  0x22   : > { %s3910_s29 = scalar_lea.vmem %s296_s27, 24576  ;;  %p3918_p9 = scmp.lt.s32.totalorder %s296_s27, %s296_s27 }
  0x23   : > { %p3911_p7 = scmp.ne.s32.totalorder %s296_s27, %s3910_s29  ;;  %p3919_p6 = scmp.lt.s32.totalorder %s3910_s29, %s3910_s29 }
  0x25   : > { %p3913_p8 = pnand %p3911_p7, %p3899_p0  ;;  %p3920_p5 = por %p3919_p6, %p3918_p9 }
  0x27   : > { %p3914_p11 = pneg %p3913_p8 }
  0x29   : > { %p3921_p10 = pnand %p3920_p5, %p3914_p11 }
  0x2b   : > { %3924 = shalt.err (!%p3921_p10)
}
  0x2c   : > { %s4027_s11 = smov 256   ;;  %s4028_s12 = smov 16  }
  0x2d   : > { %3845 = dma.hbm_to_vmem [thread:$0]  (!%p4145_p12), %s4808_s5, 24576, %s296_s27, [#allocation3], %s4027_s11, %s4027_s11, %s4028_s12  }
  0x2e   : > { %s3925_s26 = scalar_lea.hbm %s4811_s8, 24576 }
  0x2f   : > { %p3926_p13 = scmp.ne.s32.totalorder %s4811_s8, %s3925_s26  ;;  %p3932_p9 = scmp.lt.u32.totalorder %s3925_s26, %s4811_s8 }
  0x31   : > { %p3928_p5 = pnand %p3926_p13, %p3899_p0 }
  0x33   : > { %p3929_p6 = pneg %p3928_p5 }
  0x35   : > { %p3934_p10 = pnand %p3932_p9, %p3929_p6 }
  0x37   : > { %3937 = shalt.err (!%p3934_p10)
}
  0x38   : > { %s3938_s27 = scalar_lea.vmem %s4149_s30, 24576  ;;  %p3946_p4 = scmp.lt.s32.totalorder %s4149_s30, %s4149_s30 }
  0x39   : > { %p3939_p1 = scmp.ne.s32.totalorder %s4149_s30, %s3938_s27  ;;  %p3947_p7 = scmp.lt.s32.totalorder %s3938_s27, %s3938_s27 }
  0x3b   : > { %p3941_p2 = pnand %p3939_p1, %p3899_p0  ;;  %p3948_p8 = por %p3947_p7, %p3946_p4 }
  0x3d   : > { %p3942_p3 = pneg %p3941_p2 }
  0x3f   : > { %p3949_p11 = pnand %p3948_p8, %p3942_p3 }
  0x41   : > { %3952 = shalt.err (!%p3949_p11)
}
  0x42   : > { %3848 = dma.hbm_to_vmem [thread:$0]  (!%p4145_p12), %s4811_s8, 24576, %s4149_s30, [#allocation6], %s4027_s11, %s4027_s11, %s4028_s12  }
  0x43   : > { %p4829_p13 = scmp.ne.s32.totalorder %s4827_s25, 0 }
  0x44   : > { %p4830_p5 = scmp.eq.s32.totalorder (!%p4829_p13), %s4109_s17, 0 }
  0x45   : > { %342 = sbr.rel (%p4829_p13) target bundleno = 1896 (0x768), region = 60 }
  0x4c   : > { %3998 = dma.done.wait (%p4830_p5), [#allocation3], 24576   ;;  %p4831_p0 = pmov %p4830_p5 }
  0x4e   : > { %4000 = vsyncadd (%p4831_p0), [#allocation3], 4294942720  ;;  %p4832_p6 = pmov %p4831_p0 }
  0x4f   : > { %p4833_p9 = pmov %p4831_p0 }
  0x50   : > { %4002 = dma.done.wait (%p4832_p6), [#allocation6], 24576  }
  0x51   : > { %4004 = vsyncadd (%p4833_p9), [#allocation6], 4294942720  ;;  %s3052_s24 = sshll.u32 %s4109_s17, 3  ;;  %vm439_vm0 = vcmask 523264   ;;  %v399_v8 = vld [vmem:[%s4804_s1] sm:$0xff]  ;;  %v400_v13 = vld [vmem:[%s4804_s1 + $0x8] sm:$0xff] }
  0x52   : > { %p385_p10 = scmp.lt.s32.totalorder %s3052_s24, 15  ;;  %3240 = vmatprep.mubr.msk.f32.mxu0 %vm439_vm0, %v399_v8  ;;  %v401_v14 = vld [vmem:[%s4804_s1 + $0x10] sm:$0xff]  ;;  %v402_v15 = vld [vmem:[%s4804_s1 + $0x18] sm:$0xff]  ;;  %v403_v16 = vld [vmem:[%s4804_s1 + $0x20] sm:$0xff]  ;;  %v4029_v58 = vmov 0.0   ;;  %vm834_vm1 = vcmask 130048  }
  0x53   : > { %v404_v17 = vld [vmem:[%s4804_s1 + $0x28] sm:$0xff]  ;;  %v405_v18 = vld [vmem:[%s4804_s1 + $0x30] sm:$0xff]  ;;  %v406_v19 = vld [vmem:[%s4804_s1 + $0x38] sm:$0xff]  ;;  %923 = vmatprep.mubr.f32.mxu1 %v4029_v58  ;;  %s381_s30 = sand.u32 1, %s4015_s14   ;;  %s3175_s22 = sshll.u32 %s4109_s17, 9 }
  0x54   : > { %s4843_s24 = smov (!%p385_p10, %s3052_s24), 15  ;;  %v407_v20 = vld [vmem:[%s4804_s1 + $0x40] sm:$0xff]  ;;  %v408_v21 = vld [vmem:[%s4804_s1 + $0x48] sm:$0xff]  ;;  %v409_v22 = vld [vmem:[%s4804_s1 + $0x50] sm:$0xff]  ;;  %s3051_s25 = sshll.u32 %s381_s30, 5 }
  0x55   : > { %s3053_s28 = sshll.u32 %s4843_s24, 3  ;;  %v410_v23 = vld [vmem:[%s4804_s1 + $0x58] sm:$0xff]  ;;  %v411_v24 = vld [vmem:[%s4804_s1 + $0x60] sm:$0xff]  ;;  %v412_v25 = vld [vmem:[%s4804_s1 + $0x68] sm:$0xff]  ;;  %s4758_s21 = scalar_lea.hbm %s4813_s10, %s3175_s22 }
  0x56   : > { %s388_s11 = scalar_lea.vmem %s4803_s0, %s3053_s28  ;;  %v413_v26 = vld [vmem:[%s4804_s1 + $0x70] sm:$0xff]  ;;  %v414_v27 = vld [vmem:[%s4804_s1 + $0x78] sm:$0xff]  ;;  %v415_v28 = vld [vmem:[%s4804_s1 + $0x80] sm:$0xff]  ;;  %s4762_s17 = scalar_lea.sflag [#allocation4], %s381_s30 }
  0x57   : > { %v391_v0 = vld [vmem:[%s388_s11] sm:$0xff]  ;;  %v392_v1 = vld [vmem:[%s388_s11 + $0x8] sm:$0xff]  ;;  %v393_v2 = vld [vmem:[%s388_s11 + $0x10] sm:$0xff]  ;;  %p4834_p1 = scmp.ne.s32.totalorder %s4824_s23, 0  ;;  %s4030_s29 = smov [#allocation7]  }
  0x58   : > { %v3300_v3 = vpack.c.bf16 %v392_v1, %v391_v0  ;;  %v394_v4 = vld [vmem:[%s388_s11 + $0x18] sm:$0xff]  ;;  %v395_v6 = vld [vmem:[%s388_s11 + $0x20] sm:$0xff]  ;;  %v396_v7 = vld [vmem:[%s388_s11 + $0x28] sm:$0xff]  ;;  %s3957_s27 = sshll.u32 %s4030_s29, 4  ;;  %s3958_s27 = int_to_ptr.vmem [resolvable:$false] %s3957_s27 }
  0x59   : > { %v3304_v5 = vpack.c.bf16 %v394_v4, %v393_v2  ;;  %v3308_v9 = vpack.c.bf16 %v396_v7, %v395_v6  ;;  %v397_v10 = vld [vmem:[%s388_s11 + $0x30] sm:$0xff]  ;;  %v398_v11 = vld [vmem:[%s388_s11 + $0x38] sm:$0xff]  ;;  %v416_v29 = vld [vmem:[%s4804_s1 + $0x88] sm:$0xff]  ;;  %s383_s11 = scalar_lea.vmem [#allocation7], %s3051_s25  ;;  %s3959_s15 = scalar_lea.vmem %s3958_s27, 1024 }
  0x5a   : > { %3301 = vmatprep.subr.bf16.mxu0 %v3300_v3  ;;  %v3312_v12 = vpack.c.bf16 %v398_v11, %v397_v10  ;;  %v417_v30 = vld [vmem:[%s4804_s1 + $0x90] sm:$0xff]  ;;  %v418_v31 = vld [vmem:[%s4804_s1 + $0x98] sm:$0xff]  ;;  %v419_v32 = vld [vmem:[%s4804_s1 + $0xa0] sm:$0xff]  ;;  %s2959_s12 = sshll.u32 %s383_s11, 4  ;;  %s4753_s12 = int_to_ptr.vmem [resolvable:$true] %s2959_s12 }
  0x5b   : > { %3303 = vmatpush3.bf16.msra.mxu0 %v3300_v3  ;;  %v420_v33 = vld [vmem:[%s4804_s1 + $0xa8] sm:$0xff]  ;;  %v421_v34 = vld [vmem:[%s4804_s1 + $0xb0] sm:$0xff]  ;;  %v422_v35 = vld [vmem:[%s4804_s1 + $0xb8] sm:$0xff]  ;;  %s3953_s26 = scalar_lea.vmem %s4753_s12, 512  ;;  %p3960_p4 = scmp.lt.s32.totalorder %s4753_s12, %s3958_s27 }
  0x5c   : > { %3305 = vmatprep.subr.bf16.mxu0 %v3304_v5  ;;  %v423_v36 = vld [vmem:[%s4804_s1 + $0xc0] sm:$0xff]  ;;  %v424_v37 = vld [vmem:[%s4804_s1 + $0xc8] sm:$0xff]  ;;  %v425_v38 = vld [vmem:[%s4804_s1 + $0xd0] sm:$0xff]  ;;  %p3954_p12 = scmp.ne.s32.totalorder %s4753_s12, %s3953_s26  ;;  %p3961_p7 = scmp.lt.s32.totalorder %s3959_s15, %s3953_s26 }
  0x5d   : > { %v426_v39 = vld [vmem:[%s4804_s1 + $0xd8] sm:$0xff]  ;;  %v427_v40 = vld [vmem:[%s4804_s1 + $0xe0] sm:$0xff]  ;;  %v428_v41 = vld [vmem:[%s4804_s1 + $0xe8] sm:$0xff] }
  0x5e   : > { %v429_v42 = vld [vmem:[%s4804_s1 + $0xf0] sm:$0xff]  ;;  %v430_v43 = vld [vmem:[%s4804_s1 + $0xf8] sm:$0xff]  ;;  %v431_v44 = vld [vmem:[%s4804_s1 + $0x100] sm:$0xff]  ;;  %p3955_p2 = pnand %p3954_p12, %p4834_p1  ;;  %p3962_p8 = por %p3961_p7, %p3960_p4 }
  0x5f   : > { %3307 = vmatpush3.bf16.msra.mxu0 %v3304_v5  ;;  %v432_v45 = vld [vmem:[%s4804_s1 + $0x108] sm:$0xff]  ;;  %v433_v46 = vld [vmem:[%s4804_s1 + $0x110] sm:$0xff]  ;;  %v434_v47 = vld [vmem:[%s4804_s1 + $0x118] sm:$0xff] }
  0x60   : > { %3309 = vmatprep.subr.bf16.mxu0 %v3308_v9  ;;  %v435_v48 = vld [vmem:[%s4804_s1 + $0x120] sm:$0xff]  ;;  %v436_v49 = vld [vmem:[%s4804_s1 + $0x128] sm:$0xff]  ;;  %v437_v50 = vld [vmem:[%s4804_s1 + $0x130] sm:$0xff]  ;;  %p3956_p3 = pneg %p3955_p2 }
  0x61   : > { %v438_v51 = vld [vmem:[%s4804_s1 + $0x138] sm:$0xff]  ;;  %v3095_v52 = vld [vmem:[%s4805_s2 + $0x28] sm:$0xff]  ;;  %v3094_v55 = vld [vmem:[%s4805_s2 + $0x20] sm:$0xff] }
  0x62   : > { %v3097_v53 = vld [vmem:[%s4805_s2 + $0x38] sm:$0xff]  ;;  %v3096_v56 = vld [vmem:[%s4805_s2 + $0x30] sm:$0xff]  ;;  %v826_v59 = vld [vmem:[%s4805_s2 + $0x8] sm:$0xff]  ;;  %p3963_p11 = pnand %p3962_p8, %p3956_p3 }
  0x63   : > { %3311 = vmatpush3.bf16.msra.mxu0 %v3308_v9  ;;  %v3316_v54 = vpack.c.bf16 %v3097_v53, %v3095_v52  ;;  %v3318_v57 = vpack.c.bf16 %v3096_v56, %v3094_v55  ;;  %v828_v60 = vld [vmem:[%s4805_s2 + $0x18] sm:$0xff]  ;;  %v825_v5 = vld [vmem:[%s4805_s2] sm:$0xff]  ;;  %v827_v6 = vld [vmem:[%s4805_s2 + $0x10] sm:$0xff] }
  0x64   : > { %3313 = vmatprep.subr.bf16.mxu0 %v3312_v12  ;;  %v3320_v61 = vpack.c.bf16 %v828_v60, %v826_v59  ;;  %v3115_v8 = vld [vmem:[%s4805_s2 + $0x48] sm:$0xff]  ;;  %v3117_v9 = vld [vmem:[%s4805_s2 + $0x58] sm:$0xff]  ;;  %v3322_v10 = vpack.c.bf16 %v827_v6, %v825_v5  ;;  %v3138_v56 = vld [vmem:[%s4805_s2 + $0x80] sm:$0xff]  ;;  %v1585_v60 = vlaneseq }
  0x65   : > { %3317 = vmatprep.subr.bf16.mxu1 %v3316_v54  ;;  %v3141_v52 = vld [vmem:[%s4805_s2 + $0x98] sm:$0xff] }
  0x66   : > { %3319 = vmatpush1.bf16.msra.mxu1 %v3318_v57  ;;  %v3140_v57 = vld [vmem:[%s4805_s2 + $0x90] sm:$0xff] }
  0x67   : > { %3315 = vmatpush3.bf16.msra.mxu0 %v3312_v12  ;;  %3321 = vmatprep.subr.bf16.mxu1 %v3320_v61  ;;  %v3324_v12 = vpack.c.bf16 %v3117_v9, %v3115_v8  ;;  %v3334_v59 = vpack.c.bf16 %v3140_v57, %v3138_v56  ;;  %v1586_v61 = vshrl.u32 %v1585_v60, 7 }
  0x6a   : > { %3241 = vmatmul.mubr.msk.f32.vlgmr.msra.gmra.mrb[0].mxu0 %vm439_vm0, %v400_v13 }
  0x6b   : > { %3243 = vmatprep.mubr.msk.f32.mxu0 %vm439_vm0, %v401_v14 }
  0x6e   : > { %3244 = vmatmul.mubr.msk.f32.gmra.mrb[2].mxu0 %vm439_vm0, %v402_v15 }
  0x6f   : > { %3246 = vmatprep.mubr.msk.f32.mxu0 %vm439_vm0, %v403_v16 }
  0x72   : > { %3247 = vmatmul.mubr.msk.f32.gmra.mrb[4].mxu0 %vm439_vm0, %v404_v17 }
  0x73   : > { %3249 = vmatprep.mubr.msk.f32.mxu0 %vm439_vm0, %v405_v18 }
  0x76   : > { %3250 = vmatmul.mubr.msk.f32.gmra.mrb[6].mxu0 %vm439_vm0, %v406_v19 }
  0x77   : > { %3252 = vmatprep.mubr.msk.f32.mxu0 %vm439_vm0, %v407_v20 }
  0x7a   : > { %3253 = vmatmul.mubr.msk.f32.gmra.mrb[8].mxu0 %vm439_vm0, %v408_v21 }
  0x7b   : > { %3255 = vmatprep.mubr.msk.f32.mxu0 %vm439_vm0, %v409_v22 }
  0x7e   : > { %3256 = vmatmul.mubr.msk.f32.gmra.mrb[10].mxu0 %vm439_vm0, %v410_v23 }
  0x7f   : > { %3258 = vmatprep.mubr.msk.f32.mxu0 %vm439_vm0, %v411_v24 }
  0x82   : > { %3259 = vmatmul.mubr.msk.f32.gmra.mrb[12].mxu0 %vm439_vm0, %v412_v25 }
  0x83   : > { %3261 = vmatprep.mubr.msk.f32.mxu0 %vm439_vm0, %v413_v26  ;;  %v3114_v26 = vld [vmem:[%s4805_s2 + $0x40] sm:$0xff] }
  0x86   : > { %3262 = vmatmul.mubr.msk.f32.gmra.mrb[14].mxu0 %vm439_vm0, %v414_v27  ;;  %v3116_v27 = vld [vmem:[%s4805_s2 + $0x50] sm:$0xff] }
  0x87   : > { %3264 = vmatprep.mubr.msk.f32.mxu0 %vm439_vm0, %v415_v28 }
  0x8a   : > { %3265 = vmatmul.mubr.msk.f32.gmra.mrb[16].mxu0 %vm439_vm0, %v416_v29 }
  0x8b   : > { %3267 = vmatprep.mubr.msk.f32.mxu0 %vm439_vm0, %v417_v30  ;;  %v3127_v30 = vld [vmem:[%s4805_s2 + $0x68] sm:$0xff] }
  0x8e   : > { %3268 = vmatmul.mubr.msk.f32.gmra.mrb[18].mxu0 %vm439_vm0, %v418_v31  ;;  %v3129_v31 = vld [vmem:[%s4805_s2 + $0x78] sm:$0xff] }
  0x8f   : > { %3270 = vmatprep.mubr.msk.f32.mxu0 %vm439_vm0, %v419_v32  ;;  %v3326_v32 = vpack.c.bf16 %v3116_v27, %v3114_v26 }
  0x92   : > { %3271 = vmatmul.mubr.msk.f32.gmra.mrb[20].mxu0 %vm439_vm0, %v420_v33  ;;  %v3328_v33 = vpack.c.bf16 %v3129_v31, %v3127_v30 }
  0x93   : > { %3273 = vmatprep.mubr.msk.f32.mxu0 %vm439_vm0, %v421_v34 }
  0x96   : > { %3274 = vmatmul.mubr.msk.f32.gmra.mrb[22].mxu0 %vm439_vm0, %v422_v35 }
  0x97   : > { %3276 = vmatprep.mubr.msk.f32.mxu0 %vm439_vm0, %v423_v36 }
  0x9a   : > { %3277 = vmatmul.mubr.msk.f32.gmra.mrb[24].mxu0 %vm439_vm0, %v424_v37 }
  0x9b   : > { %3279 = vmatprep.mubr.msk.f32.mxu0 %vm439_vm0, %v425_v38 }
  0x9e   : > { %3280 = vmatmul.mubr.msk.f32.gmra.mrb[26].mxu0 %vm439_vm0, %v426_v39 }
  0x9f   : > { %3282 = vmatprep.mubr.msk.f32.mxu0 %vm439_vm0, %v427_v40 }
  0xa2   : > { %3283 = vmatmul.mubr.msk.f32.gmra.mrb[28].mxu0 %vm439_vm0, %v428_v41 }
  0xa3   : > { %3285 = vmatprep.mubr.msk.f32.mxu0 %vm439_vm0, %v429_v42 }
  0xa6   : > { %3286 = vmatmul.mubr.msk.f32.gmra.mrb[30].mxu0 %vm439_vm0, %v430_v43 }
  0xa7   : > { %3288 = vmatprep.mubr.msk.f32.mxu0 %vm439_vm0, %v431_v44 }
  0xaa   : > { %3289 = vmatmul.mubr.msk.f32.gmra.mrb[32].mxu0 %vm439_vm0, %v432_v45 }
  0xab   : > { %3291 = vmatprep.mubr.msk.f32.mxu0 %vm439_vm0, %v433_v46 }
  0xae   : > { %3292 = vmatmul.mubr.msk.f32.gmra.mrb[34].mxu0 %vm439_vm0, %v434_v47 }
  0xaf   : > { %3294 = vmatprep.mubr.msk.f32.mxu0 %vm439_vm0, %v435_v48  ;;  %v3126_v48 = vld [vmem:[%s4805_s2 + $0x60] sm:$0xff] }
  0xb2   : > { %3295 = vmatmul.mubr.msk.f32.gmra.mrb[36].mxu0 %vm439_vm0, %v436_v49  ;;  %v3128_v49 = vld [vmem:[%s4805_s2 + $0x70] sm:$0xff] }
  0xb3   : > { %3297 = vmatprep.mubr.msk.f32.mxu0 %vm439_vm0, %v437_v50  ;;  %v3330_v54 = vpack.c.bf16 %v3128_v49, %v3126_v48 }
  0xb6   : > { %3298 = vmatmul.mubr.msk.f32.gmra.mrb[38].mxu0 %vm439_vm0, %v438_v51  ;;  %v3139_v51 = vld [vmem:[%s4805_s2 + $0x88] sm:$0xff] }
  0xb7   : > { %1771 = vmatprep.mubr.f32.mxu0 %v4029_v58  ;;  %v3332_v55 = vpack.c.bf16 %v3141_v52, %v3139_v51 }
 0x13d   : > { %v4392_v62 = vpop.f32.mrb[0].mxu0 }
 0x13e   : > { %v626_v63 = vpop.f32.mrb[1].mxu0 }
 0x141   : > { %v4394_v0 = vpop.f32.mrb[2].mxu0 }
 0x142   : > { %v4396_v1 = vpop.f32.mrb[3].mxu0 }
 0x145   : > { %v4398_v2 = vpop.f32.mrb[4].mxu0 }
 0x146   : > { %v4400_v3 = vpop.f32.mrb[5].mxu0 }
 0x149   : > { %v4402_v4 = vpop.f32.mrb[6].mxu0 }
 0x14a   : > { %v4410_v7 = vpop.f32.mrb[7].mxu0 }
 0x14d   : > { %v3254_v11 = vpop.f32.mrb[8].mxu0 }
 0x14e   : > { %v666_v13 = vpop.f32.mrb[9].mxu0 }
 0x14f   : > { %3098 = vmatmul.mubr.msk.f32.vlgmr.msra.gmra.mrb[0].mxu1 %vm834_vm1, %v666_v13 }
 0x150   : > { %929 = vmatprep.mubr.f32.mxu1 %v4029_v58  ;;  %3323 = vmatpush1.bf16.msra.mxu1 %v3322_v10 }
 0x151   : > { %v3257_v14 = vpop.f32.mrb[10].mxu0  ;;  %3325 = vmatprep.subr.bf16.mxu1 %v3324_v12 }
 0x152   : > { %v676_v15 = vpop.f32.mrb[11].mxu0 }
 0x153   : > { %3099 = vmatmul.mubr.msk.f32.gmra.mrb[2].mxu1 %vm834_vm1, %v3254_v11 }
 0x154   : > { %935 = vmatprep.mubr.f32.mxu1 %v4029_v58 }
 0x155   : > { %v3260_v16 = vpop.f32.mrb[12].mxu0 }
 0x156   : > { %v686_v17 = vpop.f32.mrb[13].mxu0 }
 0x157   : > { %3100 = vmatmul.mubr.msk.f32.gmra.mrb[4].mxu1 %vm834_vm1, %v676_v15 }
 0x158   : > { %941 = vmatprep.mubr.f32.mxu1 %v4029_v58 }
 0x159   : > { %v3263_v18 = vpop.f32.mrb[14].mxu0 }
 0x15a   : > { %v696_v19 = vpop.f32.mrb[15].mxu0 }
 0x15b   : > { %3101 = vmatmul.mubr.msk.f32.gmra.mrb[6].mxu1 %vm834_vm1, %v3257_v14 }
 0x15c   : > { %947 = vmatprep.mubr.f32.mxu1 %v4029_v58 }
 0x15d   : > { %v4426_v20 = vpop.f32.mrb[16].mxu0 }
 0x15e   : > { %v706_v21 = vpop.f32.mrb[17].mxu0 }
 0x15f   : > { %3102 = vmatmul.mubr.msk.f32.gmra.mrb[8].mxu1 %vm834_vm1, %v686_v17 }
 0x160   : > { %953 = vmatprep.mubr.f32.mxu1 %v4029_v58 }
 0x161   : > { %v4430_v22 = vpop.f32.mrb[18].mxu0 }
 0x162   : > { %v4432_v23 = vpop.f32.mrb[19].mxu0 }
 0x163   : > { %3103 = vmatmul.mubr.msk.f32.gmra.mrb[10].mxu1 %vm834_vm1, %v3260_v16 }
 0x164   : > { %959 = vmatprep.mubr.f32.mxu1 %v4029_v58 }
 0x165   : > { %v4436_v24 = vpop.f32.mrb[20].mxu0 }
 0x166   : > { %v4438_v25 = vpop.f32.mrb[21].mxu0 }
 0x167   : > { %3104 = vmatmul.mubr.msk.f32.gmra.mrb[12].mxu1 %vm834_vm1, %v696_v19 }
 0x168   : > { %965 = vmatprep.mubr.f32.mxu1 %v4029_v58 }
 0x169   : > { %v4448_v28 = vpop.f32.mrb[22].mxu0 }
 0x16a   : > { %v736_v29 = vpop.f32.mrb[23].mxu0 }
 0x16b   : > { %3105 = vmatmul.mubr.msk.f32.gmra.mrb[14].mxu1 %vm834_vm1, %v3263_v18 }
 0x16c   : > { %1060 = vmatprep.mubr.f32.mxu1 %v4029_v58 }
 0x16d   : > { %v4458_v34 = vpop.f32.mrb[24].mxu0 }
 0x16e   : > { %v746_v35 = vpop.f32.mrb[25].mxu0 }
 0x16f   : > { %3106 = vmatmul.mubr.msk.f32.vlgmr.msra.gmra.mrb[0].mxu1 %vm834_vm1, %v626_v63  ;;  %v1583_v63 = vld [vmem:[%s4806_s3] sm:$0x3] }
 0x170   : > { %1066 = vmatprep.mubr.f32.mxu1 %v4029_v58  ;;  %3327 = vmatpush1.bf16.msra.mxu1 %v3326_v32 }
 0x171   : > { %3329 = vmatprep.subr.bf16.mxu1 %v3328_v33  ;;  %v3281_v36 = vpop.f32.mrb[26].mxu0 }
 0x172   : > { %v756_v37 = vpop.f32.mrb[27].mxu0 }
 0x173   : > { %3107 = vmatmul.mubr.msk.f32.gmra.mrb[2].mxu1 %vm834_vm1, %v4392_v62  ;;  %v4555_v62 = vsub.s32 0, %v1586_v61 }
 0x174   : > { %1072 = vmatprep.mubr.f32.mxu1 %v4029_v58 }
 0x175   : > { %v3284_v38 = vpop.f32.mrb[28].mxu0 }
 0x176   : > { %v766_v39 = vpop.f32.mrb[29].mxu0 }
 0x177   : > { %3108 = vmatmul.mubr.msk.f32.gmra.mrb[4].mxu1 %vm834_vm1, %v4396_v1  ;;  %v4563_v1 = vrot.slane %v1583_v63, %v4555_v62 }
 0x178   : > { %1078 = vmatprep.mubr.f32.mxu1 %v4029_v58 }
 0x179   : > { %v3287_v40 = vpop.f32.mrb[30].mxu0 }
 0x17a   : > { %v776_v41 = vpop.f32.mrb[31].mxu0 }
 0x17b   : > { %3109 = vmatmul.mubr.msk.f32.gmra.mrb[6].mxu1 %vm834_vm1, %v4394_v0  ;;  %v4560_v0 = vsub.s32 1, %v1586_v61 }
 0x17c   : > { %1084 = vmatprep.mubr.f32.mxu1 %v4029_v58 }
 0x17d   : > { %v3290_v42 = vpop.f32.mrb[32].mxu0 }
 0x17e   : > { %v786_v43 = vpop.f32.mrb[33].mxu0 }
 0x17f   : > { %3110 = vmatmul.mubr.msk.f32.gmra.mrb[8].mxu1 %vm834_vm1, %v4400_v3 }
 0x180   : > { %1090 = vmatprep.mubr.f32.mxu1 %v4029_v58 }
 0x181   : > { %v3293_v44 = vpop.f32.mrb[34].mxu0 }
 0x182   : > { %v796_v45 = vpop.f32.mrb[35].mxu0 }
 0x183   : > { %3111 = vmatmul.mubr.msk.f32.gmra.mrb[10].mxu1 %vm834_vm1, %v4398_v2  ;;  %v4566_v2 = vrot.slane %v1583_v63, %v4560_v0 }
 0x184   : > { %1096 = vmatprep.mubr.f32.mxu1 %v4029_v58 }
 0x185   : > { %v3296_v46 = vpop.f32.mrb[36].mxu0 }
 0x186   : > { %v806_v47 = vpop.f32.mrb[37].mxu0 }
 0x187   : > { %3112 = vmatmul.mubr.msk.f32.gmra.mrb[12].mxu1 %vm834_vm1, %v4410_v7 }
 0x188   : > { %1102 = vmatprep.mubr.f32.mxu1 %v4029_v58 }
 0x189   : > { %v3299_v50 = vpop.f32.mrb[38].mxu0 }
 0x18a   : > { %v816_v53 = vpop.f32.mrb[39].mxu0 }
 0x18b   : > { %3113 = vmatmul.mubr.msk.f32.gmra.mrb[14].mxu1 %vm834_vm1, %v4402_v4 }
 0x18c   : > { %1202 = vmatprep.mubr.f32.mxu1 %v4029_v58 }
 0x18f   : > { %3118 = vmatmul.mubr.msk.f32.vlgmr.msra.gmra.mrb[0].mxu1 %vm834_vm1, %v706_v21 }
 0x190   : > { %1208 = vmatprep.mubr.f32.mxu1 %v4029_v58  ;;  %3331 = vmatpush1.bf16.msra.mxu1 %v3330_v54 }
 0x191   : > { %3333 = vmatprep.subr.bf16.mxu1 %v3332_v55 }
 0x193   : > { %3119 = vmatmul.mubr.msk.f32.gmra.mrb[2].mxu1 %vm834_vm1, %v4426_v20 }
 0x194   : > { %1214 = vmatprep.mubr.f32.mxu1 %v4029_v58 }
 0x197   : > { %3120 = vmatmul.mubr.msk.f32.gmra.mrb[4].mxu1 %vm834_vm1, %v4432_v23 }
 0x198   : > { %1220 = vmatprep.mubr.f32.mxu1 %v4029_v58 }
 0x19b   : > { %3121 = vmatmul.mubr.msk.f32.gmra.mrb[6].mxu1 %vm834_vm1, %v4430_v22 }
 0x19c   : > { %1226 = vmatprep.mubr.f32.mxu1 %v4029_v58 }
 0x19f   : > { %3122 = vmatmul.mubr.msk.f32.gmra.mrb[8].mxu1 %vm834_vm1, %v4438_v25 }
 0x1a0   : > { %1232 = vmatprep.mubr.f32.mxu1 %v4029_v58 }
 0x1a3   : > { %3123 = vmatmul.mubr.msk.f32.gmra.mrb[10].mxu1 %vm834_vm1, %v4436_v24 }
 0x1a4   : > { %1238 = vmatprep.mubr.f32.mxu1 %v4029_v58 }
 0x1a7   : > { %3124 = vmatmul.mubr.msk.f32.gmra.mrb[12].mxu1 %vm834_vm1, %v736_v29 }
 0x1a8   : > { %1244 = vmatprep.mubr.f32.mxu1 %v4029_v58 }
 0x1ab   : > { %3125 = vmatmul.mubr.msk.f32.gmra.mrb[14].mxu1 %vm834_vm1, %v4448_v28 }
 0x1ac   : > { %1360 = vmatprep.mubr.f32.mxu1 %v4029_v58 }
 0x1af   : > { %3130 = vmatmul.mubr.msk.f32.vlgmr.msra.gmra.mrb[0].mxu1 %vm834_vm1, %v746_v35 }
 0x1b0   : > { %1366 = vmatprep.mubr.f32.mxu1 %v4029_v58  ;;  %3335 = vmatpush1.bf16.msra.mxu1 %v3334_v59 }
 0x1b3   : > { %3131 = vmatmul.mubr.msk.f32.gmra.mrb[2].mxu1 %vm834_vm1, %v4458_v34 }
 0x1b4   : > { %1372 = vmatprep.mubr.f32.mxu1 %v4029_v58 }
 0x1b7   : > { %3132 = vmatmul.mubr.msk.f32.gmra.mrb[4].mxu1 %vm834_vm1, %v756_v37 }
 0x1b8   : > { %1378 = vmatprep.mubr.f32.mxu1 %v4029_v58 }
 0x1bb   : > { %3133 = vmatmul.mubr.msk.f32.gmra.mrb[6].mxu1 %vm834_vm1, %v3281_v36 }
 0x1bc   : > { %1384 = vmatprep.mubr.f32.mxu1 %v4029_v58 }
 0x1bf   : > { %3134 = vmatmul.mubr.msk.f32.gmra.mrb[8].mxu1 %vm834_vm1, %v766_v39 }
 0x1c0   : > { %1390 = vmatprep.mubr.f32.mxu1 %v4029_v58 }
 0x1c3   : > { %3135 = vmatmul.mubr.msk.f32.gmra.mrb[10].mxu1 %vm834_vm1, %v3284_v38 }
 0x1c4   : > { %1396 = vmatprep.mubr.f32.mxu1 %v4029_v58 }
 0x1c7   : > { %3136 = vmatmul.mubr.msk.f32.gmra.mrb[12].mxu1 %vm834_vm1, %v776_v41 }
 0x1c8   : > { %1402 = vmatprep.mubr.f32.mxu1 %v4029_v58 }
 0x1cb   : > { %3137 = vmatmul.mubr.msk.f32.gmra.mrb[14].mxu1 %vm834_vm1, %v3287_v40 }
 0x1cc   : > { %1518 = vmatprep.mubr.f32.mxu1 %v4029_v58 }
 0x1cf   : > { %3142 = vmatmul.mubr.msk.f32.vlgmr.msra.gmra.mrb[0].mxu1 %vm834_vm1, %v786_v43 }
 0x1d0   : > { %1524 = vmatprep.mubr.f32.mxu1 %v4029_v58 }
 0x1d3   : > { %3143 = vmatmul.mubr.msk.f32.gmra.mrb[2].mxu1 %vm834_vm1, %v3290_v42 }
 0x1d4   : > { %1530 = vmatprep.mubr.f32.mxu1 %v4029_v58 }
 0x1d7   : > { %3144 = vmatmul.mubr.msk.f32.gmra.mrb[4].mxu1 %vm834_vm1, %v796_v45 }
 0x1d8   : > { %1536 = vmatprep.mubr.f32.mxu1 %v4029_v58 }
 0x1db   : > { %3145 = vmatmul.mubr.msk.f32.gmra.mrb[6].mxu1 %vm834_vm1, %v3293_v44 }
 0x1dc   : > { %1542 = vmatprep.mubr.f32.mxu1 %v4029_v58 }
 0x1df   : > { %3146 = vmatmul.mubr.msk.f32.gmra.mrb[8].mxu1 %vm834_vm1, %v806_v47 }
 0x1e0   : > { %1548 = vmatprep.mubr.f32.mxu1 %v4029_v58 }
 0x1e3   : > { %3147 = vmatmul.mubr.msk.f32.gmra.mrb[10].mxu1 %vm834_vm1, %v3296_v46 }
 0x1e4   : > { %1554 = vmatprep.mubr.f32.mxu1 %v4029_v58 }
 0x1e7   : > { %3148 = vmatmul.mubr.msk.f32.gmra.mrb[12].mxu1 %vm834_vm1, %v816_v53 }
 0x1e8   : > { %1560 = vmatprep.mubr.f32.mxu1 %v4029_v58 }
 0x1eb   : > { %3149 = vmatmul.mubr.msk.f32.gmra.mrb[14].mxu1 %vm834_vm1, %v3299_v50 }
 0x2a2   : > { %v1520_v3 = vpop.f32.mrb[0].mxu1 }
 0x2a3   : > { %v1595_v4 = vadd.f32 %v4563_v1, %v1520_v3  ;;  %v1522_v5 = vpop.f32.mrb[1].mxu1 }
 0x2a4   : > { %v1596_v6 = vadd.f32 %v4566_v2, %v1522_v5 }
 0x2a5   : > { %v1627_v8 = vmul.f32 0.01, %v1595_v4  ;;  %vm1611_vm2 = vcmp.ge.f32.partialorder %v1595_v4, 0.0 }
 0x2a6   : > { %v1526_v7 = vpop.f32.mrb[2].mxu1  ;;  %v1628_v11 = vmul.f32 0.01, %v1596_v6  ;;  %vm1612_vm3 = vcmp.ge.f32.partialorder %v1596_v6, 0.0 }
 0x2a7   : > { %v1597_v9 = vadd.f32 %v4563_v1, %v1526_v7  ;;  %v1528_v10 = vpop.f32.mrb[3].mxu1  ;;  %v1643_v16 = vsel %vm1611_vm2, %v1595_v4, %v1627_v8 }
 0x2a8   : > { %v1598_v12 = vadd.f32 %v4566_v2, %v1528_v10  ;;  %v1644_v22 = vsel %vm1612_vm3, %v1596_v6, %v1628_v11  ;;  %v1910_v10 = vld [vmem:[#allocation2 + $0x208] sm:$0xff]  ;;  %v1912_v11 = vld [vmem:[#allocation2 + $0x218] sm:$0xff] }
 0x2a9   : > { %vm1613_vm4 = vcmp.ge.f32.partialorder %v1597_v9, 0.0  ;;  %v1629_v13 = vmul.f32 0.01, %v1597_v9 }
 0x2aa   : > { %vm1614_vm5 = vcmp.ge.f32.partialorder %v1598_v12, 0.0  ;;  %v1630_v14 = vmul.f32 0.01, %v1598_v12  ;;  %v1532_v15 = vpop.f32.mrb[4].mxu1 }
 0x2ab   : > { %v1645_v17 = vsel %vm1613_vm4, %v1597_v9, %v1629_v13  ;;  %v1599_v18 = vadd.f32 %v4563_v1, %v1532_v15  ;;  %v1534_v19 = vpop.f32.mrb[5].mxu1 }
 0x2ac   : > { %v3338_v20 = vpack.c.bf16 %v1645_v17, %v1643_v16  ;;  %v1600_v21 = vadd.f32 %v4566_v2, %v1534_v19  ;;  %v1646_v23 = vsel %vm1614_vm5, %v1598_v12, %v1630_v14  ;;  %v3352_v17 = vpack.c.bf16 %v1912_v11, %v1910_v10  ;;  %v1911_v19 = vld [vmem:[#allocation2 + $0x210] sm:$0xff]  ;;  %v1944_v10 = vld [vmem:[#allocation2 + $0x318] sm:$0xff] }
 0x2ad   : > { %v3336_v24 = vpack.c.bf16 %v1646_v23, %v1644_v22  ;;  %v1631_v26 = vmul.f32 0.01, %v1599_v18  ;;  %vm1615_vm6 = vcmp.ge.f32.partialorder %v1599_v18, 0.0  ;;  %v1666_v11 = vld [vmem:[%s4807_s4 + $0x38] sm:$0xff] }
 0x2ae   : > { %v1538_v25 = vpop.f32.mrb[6].mxu1  ;;  %v1632_v29 = vmul.f32 0.01, %v1600_v21  ;;  %vm1616_vm7 = vcmp.ge.f32.partialorder %v1600_v21, 0.0 }
 0x2af   : > { %v1601_v27 = vadd.f32 %v4563_v1, %v1538_v25  ;;  %v1540_v28 = vpop.f32.mrb[7].mxu1  ;;  %3337 = vmatprep.subr.bf16.mxu0 %v3336_v24  ;;  %v1647_v34 = vsel %vm1615_vm6, %v1599_v18, %v1631_v26  ;;  %v1909_v18 = vld [vmem:[#allocation2 + $0x200] sm:$0xff]  ;;  %v1915_v25 = vld [vmem:[#allocation2 + $0x230] sm:$0xff]  ;;  %v1918_v26 = vld [vmem:[#allocation2 + $0x248] sm:$0xff] }
 0x2b0   : > { %v1602_v30 = vadd.f32 %v4566_v2, %v1540_v28  ;;  %3339 = vmatpush1.bf16.msra.mxu0 %v3338_v20  ;;  %v1648_v40 = vsel %vm1616_vm7, %v1600_v21, %v1632_v29  ;;  %v1914_v20 = vld [vmem:[#allocation2 + $0x228] sm:$0xff]  ;;  %v1916_v21 = vld [vmem:[#allocation2 + $0x238] sm:$0xff]  ;;  %v3354_v22 = vpack.c.bf16 %v1911_v19, %v1909_v18  ;;  %v1913_v24 = vld [vmem:[#allocation2 + $0x220] sm:$0xff] }
 0x2b1   : > { %vm1617_vm8 = vcmp.ge.f32.partialorder %v1601_v27, 0.0  ;;  %v1633_v31 = vmul.f32 0.01, %v1601_v27  ;;  %v3356_v23 = vpack.c.bf16 %v1916_v21, %v1914_v20  ;;  %v1660_v28 = vld [vmem:[%s4807_s4 + $0x8] sm:$0xff]  ;;  %v3358_v29 = vpack.c.bf16 %v1915_v25, %v1913_v24  ;;  %v1945_v20 = vld [vmem:[#allocation2 + $0x320] sm:$0xff]  ;;  %v1947_v21 = vld [vmem:[#allocation2 + $0x330] sm:$0xff] }
 0x2b2   : > { %vm1618_vm9 = vcmp.ge.f32.partialorder %v1602_v30, 0.0  ;;  %v1634_v32 = vmul.f32 0.01, %v1602_v30  ;;  %v1544_v33 = vpop.f32.mrb[8].mxu1  ;;  %v3390_v24 = vpack.c.bf16 %v1947_v21, %v1945_v20  ;;  %v1848_v20 = vld [vmem:[#allocation2 + $0x20] sm:$0xff]  ;;  %v1850_v21 = vld [vmem:[#allocation2 + $0x30] sm:$0xff] }
 0x2b3   : > { %v1649_v35 = vsel %vm1617_vm8, %v1601_v27, %v1633_v31  ;;  %v1603_v36 = vadd.f32 %v4563_v1, %v1544_v33  ;;  %v1546_v37 = vpop.f32.mrb[9].mxu1  ;;  %v1920_v27 = vld [vmem:[#allocation2 + $0x258] sm:$0xff]  ;;  %v1917_v31 = vld [vmem:[#allocation2 + $0x240] sm:$0xff]  ;;  %v1922_v33 = vld [vmem:[#allocation2 + $0x268] sm:$0xff] }
 0x2b4   : > { %v3342_v38 = vpack.c.bf16 %v1649_v35, %v1647_v34  ;;  %v1604_v39 = vadd.f32 %v4566_v2, %v1546_v37  ;;  %v1650_v41 = vsel %vm1618_vm9, %v1602_v30, %v1634_v32  ;;  %v3360_v30 = vpack.c.bf16 %v1920_v27, %v1918_v26  ;;  %v1919_v32 = vld [vmem:[#allocation2 + $0x250] sm:$0xff]  ;;  %v1924_v34 = vld [vmem:[#allocation2 + $0x278] sm:$0xff]  ;;  %v1949_v26 = vld [vmem:[#allocation2 + $0x340] sm:$0xff] }
 0x2b5   : > { %v3340_v42 = vpack.c.bf16 %v1650_v41, %v1648_v40  ;;  %v1635_v44 = vmul.f32 0.01, %v1603_v36  ;;  %vm1619_vm10 = vcmp.ge.f32.partialorder %v1603_v36, 0.0  ;;  %v1661_v35 = vld [vmem:[%s4807_s4 + $0x10] sm:$0xff]  ;;  %v3364_v37 = vpack.c.bf16 %v1924_v34, %v1922_v33  ;;  %v1926_v40 = vld [vmem:[#allocation2 + $0x288] sm:$0xff]  ;;  %v1928_v41 = vld [vmem:[#allocation2 + $0x298] sm:$0xff] }
 0x2b6   : > { %v1550_v43 = vpop.f32.mrb[10].mxu1  ;;  %v1636_v47 = vmul.f32 0.01, %v1604_v39  ;;  %vm1620_vm11 = vcmp.ge.f32.partialorder %v1604_v39, 0.0  ;;  %v1951_v27 = vld [vmem:[#allocation2 + $0x350] sm:$0xff]  ;;  %v1953_v33 = vld [vmem:[#allocation2 + $0x360] sm:$0xff] }
 0x2b7   : > { %v1605_v45 = vadd.f32 %v4563_v1, %v1550_v43  ;;  %v1552_v46 = vpop.f32.mrb[11].mxu1  ;;  %3341 = vmatprep.subr.bf16.mxu0 %v3340_v42  ;;  %v1651_v52 = vsel %vm1619_vm10, %v1603_v36, %v1635_v44  ;;  %v3362_v36 = vpack.c.bf16 %v1919_v32, %v1917_v31  ;;  %v1662_v42 = vld [vmem:[%s4807_s4 + $0x18] sm:$0xff]  ;;  %v3368_v44 = vpack.c.bf16 %v1928_v41, %v1926_v40  ;;  %v1955_v34 = vld [vmem:[#allocation2 + $0x370] sm:$0xff]  ;;  %v1957_v40 = vld [vmem:[#allocation2 + $0x380] sm:$0xff] }
 0x2b8   : > { %v1606_v48 = vadd.f32 %v4566_v2, %v1552_v46  ;;  %3343 = vmatpush1.bf16.msra.mxu0 %v3342_v38  ;;  %v1652_v59 = vsel %vm1620_vm11, %v1604_v39, %v1636_v47  ;;  %v1921_v38 = vld [vmem:[#allocation2 + $0x260] sm:$0xff]  ;;  %v1923_v39 = vld [vmem:[#allocation2 + $0x270] sm:$0xff]  ;;  %v1930_v47 = vld [vmem:[#allocation2 + $0x2a8] sm:$0xff]  ;;  %v3394_v31 = vpack.c.bf16 %v1951_v27, %v1949_v26  ;;  %vm2363_vm10 = vcmask 261120  }
 0x2b9   : > { %vm1621_vm12 = vcmp.ge.f32.partialorder %v1605_v45, 0.0  ;;  %v1637_v49 = vmul.f32 0.01, %v1605_v45  ;;  %v3366_v43 = vpack.c.bf16 %v1923_v39, %v1921_v38  ;;  %v1927_v46 = vld [vmem:[#allocation2 + $0x290] sm:$0xff]  ;;  %v3398_v38 = vpack.c.bf16 %v1955_v34, %v1953_v33  ;;  %v1852_v26 = vld [vmem:[#allocation2 + $0x40] sm:$0xff] }
 0x2ba   : > { %vm1622_vm13 = vcmp.ge.f32.partialorder %v1606_v48, 0.0  ;;  %v1638_v50 = vmul.f32 0.01, %v1606_v48  ;;  %v1556_v51 = vpop.f32.mrb[12].mxu1  ;;  %v1959_v41 = vld [vmem:[#allocation2 + $0x390] sm:$0xff]  ;;  %v1856_v34 = vld [vmem:[#allocation2 + $0x60] sm:$0xff] }
 0x2bb   : > { %v1653_v53 = vsel %vm1621_vm12, %v1605_v45, %v1637_v49  ;;  %v1607_v54 = vadd.f32 %v4563_v1, %v1556_v51  ;;  %v1558_v55 = vpop.f32.mrb[13].mxu1  ;;  %v1925_v45 = vld [vmem:[#allocation2 + $0x280] sm:$0xff]  ;;  %v1854_v27 = vld [vmem:[#allocation2 + $0x50] sm:$0xff] }
 0x2bc   : > { %v3346_v56 = vpack.c.bf16 %v1653_v53, %v1651_v52  ;;  %v1608_v57 = vadd.f32 %v4566_v2, %v1558_v55  ;;  %v1654_v60 = vsel %vm1622_vm13, %v1606_v48, %v1638_v50  ;;  %v1932_v48 = vld [vmem:[#allocation2 + $0x2b8] sm:$0xff]  ;;  %v1663_v49 = vld [vmem:[%s4807_s4 + $0x20] sm:$0xff]  ;;  %v3370_v50 = vpack.c.bf16 %v1927_v46, %v1925_v45  ;;  %v1931_v53 = vld [vmem:[#allocation2 + $0x2b0] sm:$0xff] }
 0x2bd   : > { %v3344_v61 = vpack.c.bf16 %v1654_v60, %v1652_v59  ;;  %v1639_v3 = vmul.f32 0.01, %v1607_v54  ;;  %vm1623_vm14 = vcmp.ge.f32.partialorder %v1607_v54, 0.0  ;;  %v3372_v51 = vpack.c.bf16 %v1932_v48, %v1930_v47  ;;  %v1929_v52 = vld [vmem:[#allocation2 + $0x2a0] sm:$0xff]  ;;  %v1936_v55 = vld [vmem:[#allocation2 + $0x2d8] sm:$0xff]  ;;  %v1963_v47 = vld [vmem:[#allocation2 + $0x3b0] sm:$0xff] }
 0x2be   : > { %v1562_v63 = vpop.f32.mrb[14].mxu1  ;;  %v1640_v6 = vmul.f32 0.01, %v1608_v57  ;;  %vm1624_vm15 = vcmp.ge.f32.partialorder %v1608_v57, 0.0  ;;  %v1933_v60 = vld [vmem:[#allocation2 + $0x2c0] sm:$0xff] }
 0x2bf   : > { %v1609_v4 = vadd.f32 %v4563_v1, %v1562_v63  ;;  %v1564_v5 = vpop.f32.mrb[15].mxu1  ;;  %3345 = vmatprep.subr.bf16.mxu0 %v3344_v61  ;;  %v1655_v12 = vsel %vm1623_vm14, %v1607_v54, %v1639_v3  ;;  %v1934_v54 = vld [vmem:[#allocation2 + $0x2c8] sm:$0xff]  ;;  %v1935_v61 = vld [vmem:[#allocation2 + $0x2d0] sm:$0xff]  ;;  %v1940_v3 = vld [vmem:[#allocation2 + $0x2f8] sm:$0xff] }
 0x2c0   : > { %v1610_v7 = vadd.f32 %v4566_v2, %v1564_v5  ;;  %3347 = vmatpush1.bf16.msra.mxu0 %v3346_v56  ;;  %v1656_v15 = vsel %vm1624_vm15, %v1608_v57, %v1640_v6  ;;  %v1659_v2 = vld [vmem:[%s4807_s4] sm:$0xff]  ;;  %v1664_v56 = vld [vmem:[%s4807_s4 + $0x28] sm:$0xff]  ;;  %v3374_v57 = vpack.c.bf16 %v1931_v53, %v1929_v52  ;;  %v3376_v59 = vpack.c.bf16 %v1936_v55, %v1934_v54  ;;  %v1967_v53 = vld [vmem:[#allocation2 + $0x3d0] sm:$0xff] }
 0x2c1   : > { %vm1625_vm1 = vcmp.ge.f32.partialorder %v1609_v4, 0.0  ;;  %v1641_v8 = vmul.f32 0.01, %v1609_v4  ;;  %v1938_v63 = vld [vmem:[#allocation2 + $0x2e8] sm:$0xff]  ;;  %v3378_v5 = vpack.c.bf16 %v1935_v61, %v1933_v60  ;;  %v1961_v46 = vld [vmem:[#allocation2 + $0x3a0] sm:$0xff]  ;;  %v1971_v60 = vld [vmem:[#allocation2 + $0x3f0] sm:$0xff] }
 0x2c2   : > { %vm1626_vm2 = vcmp.ge.f32.partialorder %v1610_v7, 0.0  ;;  %v1642_v9 = vmul.f32 0.01, %v1610_v7  ;;  %v3380_v6 = vpack.c.bf16 %v1940_v3, %v1938_v63  ;;  %v3406_v48 = vpack.c.bf16 %v1963_v47, %v1961_v46  ;;  %v1965_v52 = vld [vmem:[#allocation2 + $0x3c0] sm:$0xff]  ;;  %v1970_v55 = vld [vmem:[#allocation2 + $0x3e8] sm:$0xff]  ;;  %v1847_v3 = vld [vmem:[#allocation2 + $0x18] sm:$0xff] }
 0x2c3   : > { %v1657_v13 = vsel %vm1625_vm1, %v1609_v4, %v1641_v8  ;;  %v1665_v4 = vld [vmem:[%s4807_s4 + $0x30] sm:$0xff]  ;;  %v3410_v54 = vpack.c.bf16 %v1967_v53, %v1965_v52  ;;  %v1845_v63 = vld [vmem:[#allocation2 + $0x8] sm:$0xff]  ;;  %v1867_v46 = vld [vmem:[#allocation2 + $0xb8] sm:$0xff] }
 0x2c4   : > { %v3350_v14 = vpack.c.bf16 %v1657_v13, %v1655_v12  ;;  %v1658_v16 = vsel %vm1626_vm2, %v1610_v7, %v1642_v9  ;;  %v1937_v7 = vld [vmem:[#allocation2 + $0x2e0] sm:$0xff]  ;;  %v1939_v8 = vld [vmem:[#allocation2 + $0x2f0] sm:$0xff]  ;;  %v1942_v9 = vld [vmem:[#allocation2 + $0x308] sm:$0xff] }
 0x2c5   : > { %v3348_v1 = vpack.c.bf16 %v1658_v16, %v1656_v15  ;;  %v3382_v12 = vpack.c.bf16 %v1939_v8, %v1937_v7  ;;  %v3384_v13 = vpack.c.bf16 %v1944_v10, %v1942_v9  ;;  %v1943_v15 = vld [vmem:[#allocation2 + $0x310] sm:$0xff]  ;;  %v1946_v16 = vld [vmem:[#allocation2 + $0x328] sm:$0xff] }
 0x2c6   : > { %v1869_v53 = vld [vmem:[#allocation2 + $0xc8] sm:$0xff] }
 0x2c7   : > { %3349 = vmatprep.subr.bf16.mxu0 %v3348_v1  ;;  %v1948_v1 = vld [vmem:[#allocation2 + $0x338] sm:$0xff] }
 0x2c8   : > { %3351 = vmatpush1.bf16.msra.mxu0 %v3350_v14  ;;  %v1941_v14 = vld [vmem:[#allocation2 + $0x300] sm:$0xff]  ;;  %v3388_v19 = vpack.c.bf16 %v1948_v1, %v1946_v16  ;;  %v1851_v16 = vld [vmem:[#allocation2 + $0x38] sm:$0xff] }
 0x2c9   : > { %3353 = vmatprep.subr.bf16.mxu0 %v3352_v17  ;;  %v1667_v17 = vld [vmem:[%s4807_s4 + $0x40] sm:$0xff]  ;;  %v3386_v18 = vpack.c.bf16 %v1943_v15, %v1941_v14  ;;  %v1846_v14 = vld [vmem:[#allocation2 + $0x10] sm:$0xff]  ;;  %v1849_v15 = vld [vmem:[#allocation2 + $0x28] sm:$0xff] }
 0x2cb   : > { %3150 = vmatmul.mubr.msk.f32.vlgmr.msra.gmra.mrb[40].mxu0 %vm439_vm0, %v1659_v2  ;;  %v1950_v2 = vld [vmem:[#allocation2 + $0x348] sm:$0xff] }
 0x2cc   : > { %1777 = vmatprep.mubr.f32.mxu0 %v4029_v58  ;;  %3355 = vmatpush1.bf16.msra.mxu0 %v3354_v22  ;;  %v1952_v22 = vld [vmem:[#allocation2 + $0x358] sm:$0xff] }
 0x2cd   : > { %3357 = vmatprep.subr.bf16.mxu0 %v3356_v23  ;;  %v1668_v23 = vld [vmem:[%s4807_s4 + $0x48] sm:$0xff]  ;;  %v3392_v25 = vpack.c.bf16 %v1952_v22, %v1950_v2  ;;  %v1855_v22 = vld [vmem:[#allocation2 + $0x58] sm:$0xff] }
 0x2ce   : > { %v1853_v2 = vld [vmem:[#allocation2 + $0x48] sm:$0xff] }
 0x2cf   : > { %3151 = vmatmul.mubr.msk.f32.gmra.mrb[42].mxu0 %vm439_vm0, %v1660_v28  ;;  %v1954_v28 = vld [vmem:[#allocation2 + $0x368] sm:$0xff] }
 0x2d0   : > { %1783 = vmatprep.mubr.f32.mxu0 %v4029_v58  ;;  %3359 = vmatpush1.bf16.msra.mxu0 %v3358_v29  ;;  %v1956_v29 = vld [vmem:[#allocation2 + $0x378] sm:$0xff] }
 0x2d1   : > { %3361 = vmatprep.subr.bf16.mxu0 %v3360_v30  ;;  %v1669_v30 = vld [vmem:[%s4807_s4 + $0x50] sm:$0xff]  ;;  %v3396_v32 = vpack.c.bf16 %v1956_v29, %v1954_v28  ;;  %v1857_v29 = vld [vmem:[#allocation2 + $0x68] sm:$0xff] }
 0x2d3   : > { %3152 = vmatmul.mubr.msk.f32.gmra.mrb[44].mxu0 %vm439_vm0, %v1661_v35  ;;  %v1958_v35 = vld [vmem:[#allocation2 + $0x388] sm:$0xff] }
 0x2d4   : > { %1789 = vmatprep.mubr.f32.mxu0 %v4029_v58  ;;  %3363 = vmatpush1.bf16.msra.mxu0 %v3362_v36  ;;  %v1960_v36 = vld [vmem:[#allocation2 + $0x398] sm:$0xff] }
 0x2d5   : > { %3365 = vmatprep.subr.bf16.mxu0 %v3364_v37  ;;  %v1670_v37 = vld [vmem:[%s4807_s4 + $0x58] sm:$0xff]  ;;  %v3400_v39 = vpack.c.bf16 %v1960_v36, %v1958_v35  ;;  %v1858_v35 = vld [vmem:[#allocation2 + $0x70] sm:$0xff] }
 0x2d7   : > { %3153 = vmatmul.mubr.msk.f32.gmra.mrb[46].mxu0 %vm439_vm0, %v1662_v42  ;;  %v1962_v42 = vld [vmem:[#allocation2 + $0x3a8] sm:$0xff] }
 0x2d8   : > { %1795 = vmatprep.mubr.f32.mxu0 %v4029_v58  ;;  %3367 = vmatpush1.bf16.msra.mxu0 %v3366_v43  ;;  %v1964_v43 = vld [vmem:[#allocation2 + $0x3b8] sm:$0xff] }
 0x2d9   : > { %3369 = vmatprep.subr.bf16.mxu0 %v3368_v44  ;;  %v3402_v44 = vpack.c.bf16 %v1959_v41, %v1957_v40  ;;  %v3404_v45 = vpack.c.bf16 %v1964_v43, %v1962_v42  ;;  %v1860_v42 = vld [vmem:[#allocation2 + $0x80] sm:$0xff]  ;;  %v1862_v43 = vld [vmem:[#allocation2 + $0x90] sm:$0xff] }
 0x2da   : > { %v3434_v47 = vpack.c.bf16 %v1862_v43, %v1860_v42  ;;  %v1895_v42 = vld [vmem:[#allocation2 + $0x198] sm:$0xff] }
 0x2db   : > { %3154 = vmatmul.mubr.msk.f32.gmra.mrb[48].mxu0 %vm439_vm0, %v1663_v49  ;;  %v1966_v49 = vld [vmem:[#allocation2 + $0x3c8] sm:$0xff] }
 0x2dc   : > { %1801 = vmatprep.mubr.f32.mxu0 %v4029_v58  ;;  %3371 = vmatpush1.bf16.msra.mxu0 %v3370_v50  ;;  %v1968_v50 = vld [vmem:[#allocation2 + $0x3d8] sm:$0xff] }
 0x2dd   : > { %3373 = vmatprep.subr.bf16.mxu0 %v3372_v51  ;;  %v3408_v51 = vpack.c.bf16 %v1968_v50, %v1966_v49  ;;  %v1864_v50 = vld [vmem:[#allocation2 + $0xa0] sm:$0xff] }
 0x2df   : > { %3155 = vmatmul.mubr.msk.f32.gmra.mrb[50].mxu0 %vm439_vm0, %v1664_v56  ;;  %v1972_v56 = vld [vmem:[#allocation2 + $0x3f8] sm:$0xff] }
 0x2e0   : > { %1807 = vmatprep.mubr.f32.mxu0 %v4029_v58  ;;  %3375 = vmatpush1.bf16.msra.mxu0 %v3374_v57  ;;  %v3412_v57 = vpack.c.bf16 %v1972_v56, %v1970_v55 }
 0x2e1   : > { %3377 = vmatprep.subr.bf16.mxu0 %v3376_v59  ;;  %v1969_v59 = vld [vmem:[#allocation2 + $0x3e0] sm:$0xff] }
 0x2e2   : > { %v3414_v61 = vpack.c.bf16 %v1971_v60, %v1969_v59  ;;  %v1868_v59 = vld [vmem:[#allocation2 + $0xc0] sm:$0xff]  ;;  %v1870_v60 = vld [vmem:[#allocation2 + $0xd0] sm:$0xff] }
 0x2e3   : > { %3156 = vmatmul.mubr.msk.f32.gmra.mrb[52].mxu0 %vm439_vm0, %v1665_v4  ;;  %v3416_v4 = vpack.c.bf16 %v1847_v3, %v1845_v63  ;;  %v1873_v63 = vld [vmem:[#allocation2 + $0xe8] sm:$0xff]  ;;  %v1875_v3 = vld [vmem:[#allocation2 + $0xf8] sm:$0xff] }
 0x2e4   : > { %1813 = vmatprep.mubr.f32.mxu0 %v4029_v58  ;;  %3379 = vmatpush1.bf16.msra.mxu0 %v3378_v5 }
 0x2e5   : > { %3381 = vmatprep.subr.bf16.mxu0 %v3380_v6 }
 0x2e7   : > { %3157 = vmatmul.mubr.msk.f32.gmra.mrb[54].mxu0 %vm439_vm0, %v1666_v11 }
 0x2e8   : > { %1819 = vmatprep.mubr.f32.mxu0 %v4029_v58  ;;  %3383 = vmatpush1.bf16.msra.mxu0 %v3382_v12 }
 0x2e9   : > { %3385 = vmatprep.subr.bf16.mxu0 %v3384_v13  ;;  %v1844_v13 = vld [vmem:[#allocation2] sm:$0xff] }
 0x2eb   : > { %3158 = vmatmul.mubr.msk.f32.gmra.mrb[56].mxu0 %vm439_vm0, %v1667_v17  ;;  %v3418_v17 = vpack.c.bf16 %v1846_v14, %v1844_v13  ;;  %v3444_v13 = vpack.c.bf16 %v1875_v3, %v1873_v63  ;;  %v1872_v14 = vld [vmem:[#allocation2 + $0xe0] sm:$0xff]  ;;  %v1902_v3 = vld [vmem:[#allocation2 + $0x1d0] sm:$0xff] }
 0x2ec   : > { %1825 = vmatprep.mubr.f32.mxu0 %v4029_v58  ;;  %3387 = vmatpush1.bf16.msra.mxu0 %v3386_v18  ;;  %v1900_v63 = vld [vmem:[#allocation2 + $0x1c0] sm:$0xff] }
 0x2ed   : > { %3389 = vmatprep.subr.bf16.mxu0 %v3388_v19  ;;  %v3420_v19 = vpack.c.bf16 %v1851_v16, %v1849_v15  ;;  %v1874_v15 = vld [vmem:[#allocation2 + $0xf0] sm:$0xff] }
 0x2ef   : > { %3159 = vmatmul.mubr.msk.f32.gmra.mrb[58].mxu0 %vm439_vm0, %v1668_v23  ;;  %v3422_v23 = vpack.c.bf16 %v1850_v21, %v1848_v20  ;;  %v1876_v21 = vld [vmem:[#allocation2 + $0x100] sm:$0xff] }
 0x2f0   : > { %1831 = vmatprep.mubr.f32.mxu0 %v4029_v58  ;;  %3391 = vmatpush1.bf16.msra.mxu0 %v3390_v24 }
 0x2f1   : > { %3393 = vmatprep.subr.bf16.mxu0 %v3392_v25  ;;  %v3424_v25 = vpack.c.bf16 %v1855_v22, %v1853_v2  ;;  %v1878_v2 = vld [vmem:[#allocation2 + $0x110] sm:$0xff] }
 0x2f3   : > { %3160 = vmatmul.mubr.msk.f32.gmra.mrb[60].mxu0 %vm439_vm0, %v1669_v30  ;;  %v1859_v30 = vld [vmem:[#allocation2 + $0x78] sm:$0xff] }
 0x2f4   : > { %1837 = vmatprep.mubr.f32.mxu0 %v4029_v58  ;;  %3395 = vmatpush1.bf16.msra.mxu0 %v3394_v31  ;;  %v3426_v31 = vpack.c.bf16 %v1854_v27, %v1852_v26  ;;  %v3428_v33 = vpack.c.bf16 %v1859_v30, %v1857_v29  ;;  %v1880_v27 = vld [vmem:[#allocation2 + $0x120] sm:$0xff]  ;;  %v1885_v29 = vld [vmem:[#allocation2 + $0x148] sm:$0xff]  ;;  %v1887_v30 = vld [vmem:[#allocation2 + $0x158] sm:$0xff] }
 0x2f5   : > { %3397 = vmatprep.subr.bf16.mxu0 %v3396_v32 }
 0x2f7   : > { %3161 = vmatmul.mubr.msk.f32.gmra.mrb[62].mxu0 %vm439_vm0, %v1670_v37  ;;  %v1861_v37 = vld [vmem:[#allocation2 + $0x88] sm:$0xff] }
 0x2f8   : > { %3399 = vmatpush1.bf16.msra.mxu0 %v3398_v38  ;;  %v1863_v38 = vld [vmem:[#allocation2 + $0x98] sm:$0xff] }
 0x2f9   : > { %3401 = vmatprep.subr.bf16.mxu0 %v3400_v39  ;;  %v3430_v39 = vpack.c.bf16 %v1858_v35, %v1856_v34  ;;  %v3432_v41 = vpack.c.bf16 %v1863_v38, %v1861_v37  ;;  %v1886_v34 = vld [vmem:[#allocation2 + $0x150] sm:$0xff]  ;;  %v1889_v35 = vld [vmem:[#allocation2 + $0x168] sm:$0xff] }
 0x2fc   : > { %3403 = vmatpush1.bf16.msra.mxu0 %v3402_v44 }
 0x2fd   : > { %3405 = vmatprep.subr.bf16.mxu0 %v3404_v45  ;;  %v1865_v45 = vld [vmem:[#allocation2 + $0xa8] sm:$0xff] }
 0x2fe   : > { %v3436_v49 = vpack.c.bf16 %v1867_v46, %v1865_v45  ;;  %v1892_v45 = vld [vmem:[#allocation2 + $0x180] sm:$0xff]  ;;  %v1894_v46 = vld [vmem:[#allocation2 + $0x190] sm:$0xff] }
 0x300   : > { %3407 = vmatpush1.bf16.msra.mxu0 %v3406_v48 }
 0x301   : > { %3409 = vmatprep.subr.bf16.mxu0 %v3408_v51  ;;  %v1866_v51 = vld [vmem:[#allocation2 + $0xb0] sm:$0xff] }
 0x302   : > { %v3438_v55 = vpack.c.bf16 %v1866_v51, %v1864_v50  ;;  %v3466_v50 = vpack.c.bf16 %v1894_v46, %v1892_v45  ;;  %v2168_v45 = vld [vmem:[#allocation2 + $0x480] sm:$0xff]  ;;  %v2173_v46 = vld [vmem:[#allocation2 + $0x4a8] sm:$0xff] }
 0x304   : > { %3411 = vmatpush1.bf16.msra.mxu0 %v3410_v54  ;;  %v1871_v54 = vld [vmem:[#allocation2 + $0xd8] sm:$0xff] }
 0x305   : > { %3413 = vmatprep.subr.bf16.mxu0 %v3412_v57  ;;  %v3440_v57 = vpack.c.bf16 %v1871_v54, %v1869_v53  ;;  %v1896_v53 = vld [vmem:[#allocation2 + $0x1a0] sm:$0xff]  ;;  %v1898_v54 = vld [vmem:[#allocation2 + $0x1b0] sm:$0xff] }
 0x308   : > { %3415 = vmatpush1.bf16.msra.mxu0 %v3414_v61 }
 0x309   : > { %3417 = vmatprep.subr.bf16.mxu0 %v3416_v4  ;;  %v3442_v4 = vpack.c.bf16 %v1870_v60, %v1868_v59  ;;  %v3470_v59 = vpack.c.bf16 %v1898_v54, %v1896_v53 }
 0x39e   : > { %v4643_v5 = vpop.f32.mrb[40].mxu0 }
 0x39f   : > { %v1775_v6 = vpop.f32.mrb[41].mxu0 }
 0x3a2   : > { %v4645_v7 = vpop.f32.mrb[42].mxu0 }
 0x3a3   : > { %v4647_v8 = vpop.f32.mrb[43].mxu0 }
 0x3a6   : > { %v4649_v9 = vpop.f32.mrb[44].mxu0 }
 0x3a7   : > { %v4651_v10 = vpop.f32.mrb[45].mxu0 }
 0x3aa   : > { %v4653_v11 = vpop.f32.mrb[46].mxu0 }
 0x3ab   : > { %v4655_v12 = vpop.f32.mrb[47].mxu0 }
 0x3ae   : > { %v1797_v1 = vpop.f32.mrb[48].mxu0 }
 0x3af   : > { %v1799_v18 = vpop.f32.mrb[49].mxu0 }
 0x3b0   : > { %2037 = vmatprep.mubr.f32.mxu0 %v1799_v18  ;;  %v3446_v18 = vpack.c.bf16 %v1874_v15, %v1872_v14  ;;  %v3474_v14 = vpack.c.bf16 %v1902_v3, %v1900_v63  ;;  %v2180_v3 = vld [vmem:[#allocation2 + $0x4e0] sm:$0xff] }
 0x3b1   : > { %2038 = vmatmul.mubr.f32.vlgmr.msra.gmra.mrb[64].mxu0 %v1797_v1  ;;  %v1877_v1 = vld [vmem:[#allocation2 + $0x108] sm:$0xff] }
 0x3b2   : > { %3419 = vmatpush1.bf16.msra.mxu0 %v3418_v17  ;;  %v1803_v24 = vpop.f32.mrb[50].mxu0  ;;  %v1879_v17 = vld [vmem:[#allocation2 + $0x118] sm:$0xff] }
 0x3b3   : > { %3421 = vmatprep.subr.bf16.mxu0 %v3420_v19  ;;  %v1805_v28 = vpop.f32.mrb[51].mxu0  ;;  %v3448_v20 = vpack.c.bf16 %v1879_v17, %v1877_v1  ;;  %v1904_v1 = vld [vmem:[#allocation2 + $0x1e0] sm:$0xff]  ;;  %v1906_v17 = vld [vmem:[#allocation2 + $0x1f0] sm:$0xff] }
 0x3b4   : > { %2043 = vmatprep.mubr.f32.mxu0 %v1805_v28  ;;  %v1882_v28 = vld [vmem:[#allocation2 + $0x130] sm:$0xff] }
 0x3b5   : > { %2044 = vmatmul.mubr.f32.gmra.mrb[66].mxu0 %v1803_v24  ;;  %v1883_v24 = vld [vmem:[#allocation2 + $0x138] sm:$0xff] }
 0x3b6   : > { %3423 = vmatpush1.bf16.msra.mxu0 %v3422_v23  ;;  %v1809_v32 = vpop.f32.mrb[52].mxu0  ;;  %v1881_v23 = vld [vmem:[#allocation2 + $0x128] sm:$0xff] }
 0x3b7   : > { %3425 = vmatprep.subr.bf16.mxu0 %v3424_v25  ;;  %v1811_v36 = vpop.f32.mrb[53].mxu0  ;;  %v3450_v25 = vpack.c.bf16 %v1878_v2, %v1876_v21  ;;  %v3452_v26 = vpack.c.bf16 %v1883_v24, %v1881_v23  ;;  %v3478_v21 = vpack.c.bf16 %v1906_v17, %v1904_v1  ;;  %v2152_v23 = vld [vmem:[#allocation2 + $0x400] sm:$0xff]  ;;  %v2154_v24 = vld [vmem:[#allocation2 + $0x410] sm:$0xff] }
 0x3b8   : > { %2049 = vmatprep.mubr.f32.mxu0 %v1811_v36  ;;  %v1891_v36 = vld [vmem:[#allocation2 + $0x178] sm:$0xff]  ;;  %v2184_v1 = vld [vmem:[#allocation2 + $0x500] sm:$0xff]  ;;  %v2186_v17 = vld [vmem:[#allocation2 + $0x510] sm:$0xff] }
 0x3b9   : > { %2050 = vmatmul.mubr.f32.gmra.mrb[68].mxu0 %v1809_v32  ;;  %v3456_v32 = vpack.c.bf16 %v1887_v30, %v1885_v29  ;;  %v3460_v38 = vpack.c.bf16 %v1891_v36, %v1889_v35  ;;  %v2156_v29 = vld [vmem:[#allocation2 + $0x420] sm:$0xff]  ;;  %v2158_v30 = vld [vmem:[#allocation2 + $0x430] sm:$0xff] }
 0x3ba   : > { %3427 = vmatpush1.bf16.msra.mxu0 %v3426_v31  ;;  %v1815_v40 = vpop.f32.mrb[54].mxu0  ;;  %v3454_v31 = vpack.c.bf16 %v1882_v28, %v1880_v27  ;;  %v3482_v27 = vpack.c.bf16 %v2154_v24, %v2152_v23  ;;  %v2160_v35 = vld [vmem:[#allocation2 + $0x440] sm:$0xff]  ;;  %v2162_v36 = vld [vmem:[#allocation2 + $0x450] sm:$0xff] }
 0x3bb   : > { %3429 = vmatprep.subr.bf16.mxu0 %v3428_v33  ;;  %v1817_v44 = vpop.f32.mrb[55].mxu0  ;;  %v1884_v33 = vld [vmem:[#allocation2 + $0x140] sm:$0xff]  ;;  %v2190_v24 = vld [vmem:[#allocation2 + $0x530] sm:$0xff] }
 0x3bc   : > { %2055 = vmatprep.mubr.f32.mxu0 %v1817_v44  ;;  %v3458_v37 = vpack.c.bf16 %v1886_v34, %v1884_v33  ;;  %v3486_v33 = vpack.c.bf16 %v2158_v30, %v2156_v29  ;;  %v2188_v23 = vld [vmem:[#allocation2 + $0x520] sm:$0xff]  ;;  %v2194_v30 = vld [vmem:[#allocation2 + $0x550] sm:$0xff] }
 0x3bd   : > { %2056 = vmatmul.mubr.f32.gmra.mrb[70].mxu0 %v1815_v40  ;;  %v1890_v40 = vld [vmem:[#allocation2 + $0x170] sm:$0xff]  ;;  %v2192_v29 = vld [vmem:[#allocation2 + $0x540] sm:$0xff] }
 0x3be   : > { %3431 = vmatpush1.bf16.msra.mxu0 %v3430_v39  ;;  %2126 = vmatprep.mubr.f32.mxu0 %v1775_v6  ;;  %v4657_v48 = vpop.f32.mrb[56].mxu0  ;;  %v1888_v39 = vld [vmem:[#allocation2 + $0x160] sm:$0xff] }
 0x3bf   : > { %3433 = vmatprep.subr.bf16.mxu0 %v3432_v41  ;;  %v4659_v52 = vpop.f32.mrb[57].mxu0  ;;  %v1893_v41 = vld [vmem:[#allocation2 + $0x188] sm:$0xff]  ;;  %v3462_v43 = vpack.c.bf16 %v1890_v40, %v1888_v39  ;;  %v3490_v39 = vpack.c.bf16 %v2162_v36, %v2160_v35  ;;  %v2196_v35 = vld [vmem:[#allocation2 + $0x560] sm:$0xff]  ;;  %v2198_v36 = vld [vmem:[#allocation2 + $0x570] sm:$0xff] }
 0x3c0   : > { %v3464_v44 = vpack.c.bf16 %v1895_v42, %v1893_v41  ;;  %v2164_v41 = vld [vmem:[#allocation2 + $0x460] sm:$0xff]  ;;  %v2169_v42 = vld [vmem:[#allocation2 + $0x488] sm:$0xff] }
 0x3c2   : > { %3435 = vmatpush1.bf16.msra.mxu0 %v3434_v47  ;;  %v4661_v56 = vpop.f32.mrb[58].mxu0  ;;  %v1897_v47 = vld [vmem:[#allocation2 + $0x1a8] sm:$0xff] }
 0x3c3   : > { %3437 = vmatprep.subr.bf16.mxu0 %v3436_v49  ;;  %v4663_v61 = vpop.f32.mrb[59].mxu0  ;;  %v1899_v49 = vld [vmem:[#allocation2 + $0x1b8] sm:$0xff] }
 0x3c4   : > { %v3468_v51 = vpack.c.bf16 %v1899_v49, %v1897_v47 }
 0x3c6   : > { %3439 = vmatpush1.bf16.msra.mxu0 %v3438_v55  ;;  %v4665_v6 = vpop.f32.mrb[60].mxu0  ;;  %v1901_v55 = vld [vmem:[#allocation2 + $0x1c8] sm:$0xff] }
 0x3c7   : > { %3441 = vmatprep.subr.bf16.mxu0 %v3440_v57  ;;  %v4667_v16 = vpop.f32.mrb[61].mxu0  ;;  %v1903_v57 = vld [vmem:[#allocation2 + $0x1d8] sm:$0xff] }
 0x3c8   : > { %v3472_v60 = vpack.c.bf16 %v1903_v57, %v1901_v55  ;;  %v2176_v55 = vld [vmem:[#allocation2 + $0x4c0] sm:$0xff]  ;;  %v2178_v57 = vld [vmem:[#allocation2 + $0x4d0] sm:$0xff] }
 0x3ca   : > { %3443 = vmatpush1.bf16.msra.mxu0 %v3442_v4  ;;  %v4669_v19 = vpop.f32.mrb[62].mxu0  ;;  %v1905_v4 = vld [vmem:[#allocation2 + $0x1e8] sm:$0xff] }
 0x3cb   : > { %3445 = vmatprep.subr.bf16.mxu0 %v3444_v13  ;;  %v4671_v22 = vpop.f32.mrb[63].mxu0  ;;  %v1907_v13 = vld [vmem:[#allocation2 + $0x1f8] sm:$0xff] }
 0x3cc   : > { %v3476_v15 = vpack.c.bf16 %v1907_v13, %v1905_v4  ;;  %v2185_v4 = vld [vmem:[#allocation2 + $0x508] sm:$0xff]  ;;  %v2187_v13 = vld [vmem:[#allocation2 + $0x518] sm:$0xff] }
 0x3ce   : > { %3447 = vmatpush1.bf16.msra.mxu0 %v3446_v18  ;;  %v2153_v18 = vld [vmem:[#allocation2 + $0x408] sm:$0xff] }
 0x3cf   : > { %3449 = vmatprep.subr.bf16.mxu0 %v3448_v20  ;;  %v2155_v20 = vld [vmem:[#allocation2 + $0x418] sm:$0xff] }
 0x3d0   : > { %v3480_v2 = vpack.c.bf16 %v2155_v20, %v2153_v18  ;;  %v2189_v18 = vld [vmem:[#allocation2 + $0x528] sm:$0xff]  ;;  %v2191_v20 = vld [vmem:[#allocation2 + $0x538] sm:$0xff] }
 0x3d2   : > { %3451 = vmatpush1.bf16.msra.mxu0 %v3450_v25  ;;  %v2157_v25 = vld [vmem:[#allocation2 + $0x428] sm:$0xff] }
 0x3d3   : > { %3453 = vmatprep.subr.bf16.mxu0 %v3452_v26  ;;  %v2159_v26 = vld [vmem:[#allocation2 + $0x438] sm:$0xff] }
 0x3d4   : > { %v3484_v28 = vpack.c.bf16 %v2159_v26, %v2157_v25  ;;  %v2193_v25 = vld [vmem:[#allocation2 + $0x548] sm:$0xff]  ;;  %v2195_v26 = vld [vmem:[#allocation2 + $0x558] sm:$0xff] }
 0x3d6   : > { %3455 = vmatpush1.bf16.msra.mxu0 %v3454_v31  ;;  %v2161_v31 = vld [vmem:[#allocation2 + $0x448] sm:$0xff] }
 0x3d7   : > { %3457 = vmatprep.subr.bf16.mxu0 %v3456_v32  ;;  %v2163_v32 = vld [vmem:[#allocation2 + $0x458] sm:$0xff] }
 0x3d8   : > { %v3488_v34 = vpack.c.bf16 %v2163_v32, %v2161_v31  ;;  %v2197_v31 = vld [vmem:[#allocation2 + $0x568] sm:$0xff]  ;;  %v2199_v32 = vld [vmem:[#allocation2 + $0x578] sm:$0xff] }
 0x3da   : > { %3459 = vmatpush1.bf16.msra.mxu0 %v3458_v37  ;;  %v2165_v37 = vld [vmem:[#allocation2 + $0x468] sm:$0xff] }
 0x3db   : > { %3461 = vmatprep.subr.bf16.mxu0 %v3460_v38  ;;  %v2167_v38 = vld [vmem:[#allocation2 + $0x478] sm:$0xff] }
 0x3dc   : > { %v3492_v40 = vpack.c.bf16 %v2167_v38, %v2165_v37  ;;  %v2201_v37 = vld [vmem:[#allocation2 + $0x588] sm:$0xff]  ;;  %v2203_v38 = vld [vmem:[#allocation2 + $0x598] sm:$0xff] }
 0x3de   : > { %3463 = vmatpush1.bf16.msra.mxu0 %v3462_v43 }
 0x3df   : > { %3465 = vmatprep.subr.bf16.mxu0 %v3464_v44 }
 0x3e2   : > { %3467 = vmatpush1.bf16.msra.mxu0 %v3466_v50  ;;  %v2172_v50 = vld [vmem:[#allocation2 + $0x4a0] sm:$0xff] }
 0x3e3   : > { %3469 = vmatprep.subr.bf16.mxu0 %v3468_v51  ;;  %v2177_v51 = vld [vmem:[#allocation2 + $0x4c8] sm:$0xff] }
 0x3e6   : > { %3471 = vmatpush1.bf16.msra.mxu0 %v3470_v59  ;;  %v2181_v59 = vld [vmem:[#allocation2 + $0x4e8] sm:$0xff] }
 0x3e7   : > { %3473 = vmatprep.subr.bf16.mxu0 %v3472_v60  ;;  %v2183_v60 = vld [vmem:[#allocation2 + $0x4f8] sm:$0xff] }
 0x3e8   : > { %v3508_v63 = vpack.c.bf16 %v2183_v60, %v2181_v59  ;;  %v2549_v60 = vld [vmem:[#allocation5 + $0x208] sm:$0xff] }
 0x3ea   : > { %3475 = vmatpush1.bf16.msra.mxu0 %v3474_v14 }
 0x3eb   : > { %3477 = vmatprep.subr.bf16.mxu0 %v3476_v15  ;;  %v3512_v15 = vpack.c.bf16 %v2187_v13, %v2185_v4  ;;  %v2555_v4 = vld [vmem:[#allocation5 + $0x238] sm:$0xff] }
 0x3ee   : > { %3479 = vmatpush1.bf16.msra.mxu0 %v3478_v21  ;;  %v3514_v21 = vpack.c.bf16 %v2186_v17, %v2184_v1  ;;  %v2558_v1 = vld [vmem:[#allocation5 + $0x250] sm:$0xff]  ;;  %v2561_v17 = vld [vmem:[#allocation5 + $0x268] sm:$0xff] }
 0x3ef   : > { %3481 = vmatprep.subr.bf16.mxu0 %v3480_v2  ;;  %v3516_v2 = vpack.c.bf16 %v2191_v20, %v2189_v18  ;;  %v2563_v18 = vld [vmem:[#allocation5 + $0x278] sm:$0xff] }
 0x3f1   : > { %2127 = vmatmul.mubr.f32.vlgmr.msra.gmra.mrb[64].mxu0 %v4643_v5  ;;  %v2166_v5 = vld [vmem:[#allocation2 + $0x470] sm:$0xff] }
 0x3f2   : > { %2132 = vmatprep.mubr.f32.mxu0 %v4647_v8  ;;  %3483 = vmatpush1.bf16.msra.mxu0 %v3482_v27  ;;  %v2171_v8 = vld [vmem:[#allocation2 + $0x498] sm:$0xff]  ;;  %v3494_v43 = vpack.c.bf16 %v2166_v5, %v2164_v41  ;;  %v3518_v27 = vpack.c.bf16 %v2190_v24, %v2188_v23  ;;  %v2200_v41 = vld [vmem:[#allocation2 + $0x580] sm:$0xff]  ;;  %v2202_v5 = vld [vmem:[#allocation2 + $0x590] sm:$0xff] }
 0x3f3   : > { %3485 = vmatprep.subr.bf16.mxu0 %v3484_v28  ;;  %v3496_v44 = vpack.c.bf16 %v2171_v8, %v2169_v42  ;;  %v3520_v28 = vpack.c.bf16 %v2195_v26, %v2193_v25  ;;  %v2205_v42 = vld [vmem:[#allocation2 + $0x5a8] sm:$0xff]  ;;  %v2207_v8 = vld [vmem:[#allocation2 + $0x5b8] sm:$0xff]  ;;  %v2562_v23 = vld [vmem:[#allocation5 + $0x270] sm:$0xff] }
 0x3f4   : > { %v2565_v24 = vld [vmem:[#allocation5 + $0x288] sm:$0xff]  ;;  %v2567_v25 = vld [vmem:[#allocation5 + $0x298] sm:$0xff] }
 0x3f5   : > { %2133 = vmatmul.mubr.f32.gmra.mrb[66].mxu0 %v4645_v7  ;;  %v2170_v7 = vld [vmem:[#allocation2 + $0x490] sm:$0xff] }
 0x3f6   : > { %2138 = vmatprep.mubr.f32.mxu0 %v4651_v10  ;;  %3487 = vmatpush1.bf16.msra.mxu0 %v3486_v33  ;;  %v2175_v10 = vld [vmem:[#allocation2 + $0x4b8] sm:$0xff]  ;;  %v3498_v47 = vpack.c.bf16 %v2170_v7, %v2168_v45  ;;  %v3522_v33 = vpack.c.bf16 %v2194_v30, %v2192_v29  ;;  %v2204_v45 = vld [vmem:[#allocation2 + $0x5a0] sm:$0xff]  ;;  %v2206_v7 = vld [vmem:[#allocation2 + $0x5b0] sm:$0xff] }
 0x3f7   : > { %3489 = vmatprep.subr.bf16.mxu0 %v3488_v34  ;;  %v3500_v49 = vpack.c.bf16 %v2175_v10, %v2173_v46  ;;  %v3524_v34 = vpack.c.bf16 %v2199_v32, %v2197_v31  ;;  %v2209_v46 = vld [vmem:[#allocation2 + $0x5c8] sm:$0xff]  ;;  %v2211_v10 = vld [vmem:[#allocation2 + $0x5d8] sm:$0xff]  ;;  %v2566_v29 = vld [vmem:[#allocation5 + $0x290] sm:$0xff] }
 0x3f8   : > { %v2569_v30 = vld [vmem:[#allocation5 + $0x2a8] sm:$0xff]  ;;  %v2571_v31 = vld [vmem:[#allocation5 + $0x2b8] sm:$0xff] }
 0x3f9   : > { %2139 = vmatmul.mubr.f32.gmra.mrb[68].mxu0 %v4649_v9  ;;  %v2174_v9 = vld [vmem:[#allocation2 + $0x4b0] sm:$0xff] }
 0x3fa   : > { %2144 = vmatprep.mubr.f32.mxu0 %v4655_v12  ;;  %3491 = vmatpush1.bf16.msra.mxu0 %v3490_v39  ;;  %v2179_v12 = vld [vmem:[#allocation2 + $0x4d8] sm:$0xff]  ;;  %v3502_v53 = vpack.c.bf16 %v2174_v9, %v2172_v50  ;;  %v3526_v39 = vpack.c.bf16 %v2198_v36, %v2196_v35  ;;  %v2208_v50 = vld [vmem:[#allocation2 + $0x5c0] sm:$0xff]  ;;  %v2210_v9 = vld [vmem:[#allocation2 + $0x5d0] sm:$0xff] }
 0x3fb   : > { %3493 = vmatprep.subr.bf16.mxu0 %v3492_v40  ;;  %v3504_v54 = vpack.c.bf16 %v2179_v12, %v2177_v51  ;;  %v3528_v40 = vpack.c.bf16 %v2203_v38, %v2201_v37  ;;  %v2213_v51 = vld [vmem:[#allocation2 + $0x5e8] sm:$0xff]  ;;  %v2215_v12 = vld [vmem:[#allocation2 + $0x5f8] sm:$0xff]  ;;  %v2570_v35 = vld [vmem:[#allocation5 + $0x2b0] sm:$0xff] }
 0x3fc   : > { %v2573_v36 = vld [vmem:[#allocation5 + $0x2c8] sm:$0xff]  ;;  %v2575_v37 = vld [vmem:[#allocation5 + $0x2d8] sm:$0xff] }
 0x3fd   : > { %2145 = vmatmul.mubr.f32.gmra.mrb[70].mxu0 %v4653_v11  ;;  %v3506_v11 = vpack.c.bf16 %v2178_v57, %v2176_v55  ;;  %v2212_v55 = vld [vmem:[#allocation2 + $0x5e0] sm:$0xff]  ;;  %v2214_v57 = vld [vmem:[#allocation2 + $0x5f0] sm:$0xff] }
 0x3fe   : > { %3495 = vmatpush1.bf16.msra.mxu0 %v3494_v43  ;;  %2280 = vmatprep.mubr.f32.mxu0 %v4659_v52  ;;  %v2182_v52 = vld [vmem:[#allocation2 + $0x4f0] sm:$0xff]  ;;  %v3530_v43 = vpack.c.bf16 %v2202_v5, %v2200_v41  ;;  %v3542_v59 = vpack.c.bf16 %v2214_v57, %v2212_v55  ;;  %v2577_v5 = vld [vmem:[#allocation5 + $0x2e8] sm:$0xff] }
 0x3ff   : > { %3497 = vmatprep.subr.bf16.mxu0 %v3496_v44  ;;  %v3510_v14 = vpack.c.bf16 %v2182_v52, %v2180_v3  ;;  %v3532_v44 = vpack.c.bf16 %v2207_v8, %v2205_v42  ;;  %v2550_v52 = vld [vmem:[#allocation5 + $0x210] sm:$0xff]  ;;  %v2579_v42 = vld [vmem:[#allocation5 + $0x2f8] sm:$0xff]  ;;  %v2589_v57 = vld [vmem:[#allocation5 + $0x348] sm:$0xff] }
 0x400   : > { %v2574_v41 = vld [vmem:[#allocation5 + $0x2d0] sm:$0xff] }
 0x401   : > { %v2586_v55 = vld [vmem:[#allocation5 + $0x330] sm:$0xff] }
 0x402   : > { %3499 = vmatpush1.bf16.msra.mxu0 %v3498_v47  ;;  %v3534_v47 = vpack.c.bf16 %v2206_v7, %v2204_v45  ;;  %v2578_v45 = vld [vmem:[#allocation5 + $0x2f0] sm:$0xff]  ;;  %v2581_v7 = vld [vmem:[#allocation5 + $0x308] sm:$0xff] }
 0x403   : > { %3501 = vmatprep.subr.bf16.mxu0 %v3500_v49  ;;  %v3536_v49 = vpack.c.bf16 %v2211_v10, %v2209_v46  ;;  %v2583_v46 = vld [vmem:[#allocation5 + $0x318] sm:$0xff] }
 0x406   : > { %3503 = vmatpush1.bf16.msra.mxu0 %v3502_v53  ;;  %v3538_v53 = vpack.c.bf16 %v2210_v9, %v2208_v50  ;;  %v2582_v50 = vld [vmem:[#allocation5 + $0x310] sm:$0xff]  ;;  %v2585_v9 = vld [vmem:[#allocation5 + $0x328] sm:$0xff] }
 0x407   : > { %3505 = vmatprep.subr.bf16.mxu0 %v3504_v54  ;;  %v3540_v54 = vpack.c.bf16 %v2215_v12, %v2213_v51  ;;  %v2587_v51 = vld [vmem:[#allocation5 + $0x338] sm:$0xff] }
 0x40a   : > { %3507 = vmatpush1.bf16.msra.mxu0 %v3506_v11  ;;  %v2551_v11 = vld [vmem:[#allocation5 + $0x218] sm:$0xff] }
 0x40b   : > { %3509 = vmatprep.subr.bf16.mxu0 %v3508_v63  ;;  %v2548_v63 = vld [vmem:[#allocation5 + $0x200] sm:$0xff]  ;;  %v3552_v3 = vpack.c.bf16 %v2551_v11, %v2549_v60 }
 0x40d   : > { %3553 = vmatprep.subr.bf16.mxu1 %v3552_v3  ;;  %v2590_v3 = vld [vmem:[#allocation5 + $0x350] sm:$0xff] }
 0x40e   : > { %3511 = vmatpush1.bf16.msra.mxu0 %v3510_v14  ;;  %v2554_v14 = vld [vmem:[#allocation5 + $0x230] sm:$0xff] }
 0x40f   : > { %3513 = vmatprep.subr.bf16.mxu0 %v3512_v15  ;;  %v2556_v15 = vld [vmem:[#allocation5 + $0x240] sm:$0xff] }
 0x410   : > { %v3562_v20 = vpack.c.bf16 %v2558_v1, %v2556_v15  ;;  %v2598_v15 = vld [vmem:[#allocation5 + $0x390] sm:$0xff]  ;;  %v2601_v1 = vld [vmem:[#allocation5 + $0x3a8] sm:$0xff] }
 0x412   : > { %3515 = vmatpush1.bf16.msra.mxu0 %v3514_v21  ;;  %v3564_v21 = vpack.c.bf16 %v2563_v18, %v2561_v17  ;;  %v2603_v17 = vld [vmem:[#allocation5 + $0x3b8] sm:$0xff] }
 0x413   : > { %3517 = vmatprep.subr.bf16.mxu0 %v3516_v2  ;;  %v2560_v2 = vld [vmem:[#allocation5 + $0x260] sm:$0xff] }
 0x414   : > { %v3566_v26 = vpack.c.bf16 %v2562_v23, %v2560_v2  ;;  %v2602_v2 = vld [vmem:[#allocation5 + $0x3b0] sm:$0xff]  ;;  %v2605_v23 = vld [vmem:[#allocation5 + $0x3c8] sm:$0xff] }
 0x416   : > { %3519 = vmatpush1.bf16.msra.mxu0 %v3518_v27  ;;  %v3568_v27 = vpack.c.bf16 %v2567_v25, %v2565_v24  ;;  %v2607_v24 = vld [vmem:[#allocation5 + $0x3d8] sm:$0xff] }
 0x417   : > { %3521 = vmatprep.subr.bf16.mxu0 %v3520_v28  ;;  %v2564_v28 = vld [vmem:[#allocation5 + $0x280] sm:$0xff] }
 0x418   : > { %v3570_v32 = vpack.c.bf16 %v2566_v29, %v2564_v28  ;;  %v2606_v28 = vld [vmem:[#allocation5 + $0x3d0] sm:$0xff] }
 0x41a   : > { %3523 = vmatpush1.bf16.msra.mxu0 %v3522_v33  ;;  %v3572_v33 = vpack.c.bf16 %v2571_v31, %v2569_v30  ;;  %v2313_v30 = vld [vmem:[%s4809_s6] sm:$0x3] }
 0x41b   : > { %3525 = vmatprep.subr.bf16.mxu0 %v3524_v34  ;;  %v2568_v34 = vld [vmem:[#allocation5 + $0x2a0] sm:$0xff]  ;;  %v2318_v31 = vrot.slane %v2313_v30, %v4555_v62 }
 0x41c   : > { %v3574_v38 = vpack.c.bf16 %v2570_v35, %v2568_v34 }
 0x41e   : > { %3527 = vmatpush1.bf16.msra.mxu0 %v3526_v39  ;;  %v3576_v39 = vpack.c.bf16 %v2575_v37, %v2573_v36 }
 0x41f   : > { %3529 = vmatprep.subr.bf16.mxu0 %v3528_v40  ;;  %v2572_v40 = vld [vmem:[#allocation5 + $0x2c0] sm:$0xff] }
 0x420   : > { %v3578_v8 = vpack.c.bf16 %v2574_v41, %v2572_v40 }
 0x422   : > { %3531 = vmatpush1.bf16.msra.mxu0 %v3530_v43  ;;  %v3580_v43 = vpack.c.bf16 %v2579_v42, %v2577_v5 }
 0x423   : > { %3533 = vmatprep.subr.bf16.mxu0 %v3532_v44  ;;  %v2576_v44 = vld [vmem:[#allocation5 + $0x2e0] sm:$0xff] }
 0x424   : > { %v3582_v10 = vpack.c.bf16 %v2578_v45, %v2576_v44 }
 0x426   : > { %3535 = vmatpush1.bf16.msra.mxu0 %v3534_v47  ;;  %v3584_v47 = vpack.c.bf16 %v2583_v46, %v2581_v7 }
 0x427   : > { %3537 = vmatprep.subr.bf16.mxu0 %v3536_v49  ;;  %v2580_v49 = vld [vmem:[#allocation5 + $0x300] sm:$0xff] }
 0x428   : > { %v3586_v12 = vpack.c.bf16 %v2582_v50, %v2580_v49 }
 0x42a   : > { %3539 = vmatpush1.bf16.msra.mxu0 %v3538_v53  ;;  %v3588_v53 = vpack.c.bf16 %v2587_v51, %v2585_v9 }
 0x42b   : > { %3541 = vmatprep.subr.bf16.mxu0 %v3540_v54  ;;  %v2584_v54 = vld [vmem:[#allocation5 + $0x320] sm:$0xff] }
 0x42c   : > { %v3590_v60 = vpack.c.bf16 %v2586_v55, %v2584_v54 }
 0x42e   : > { %3543 = vmatpush1.bf16.msra.mxu0 %v3542_v59  ;;  %v2591_v59 = vld [vmem:[#allocation5 + $0x358] sm:$0xff] }
 0x42f   : > { %v3592_v11 = vpack.c.bf16 %v2591_v59, %v2589_v57 }
 0x431   : > { %2281 = vmatmul.mubr.f32.vlgmr.msra.gmra.mrb[64].mxu0 %v4657_v48  ;;  %v2553_v48 = vld [vmem:[#allocation5 + $0x228] sm:$0xff] }
 0x432   : > { %2286 = vmatprep.mubr.f32.mxu0 %v4663_v61  ;;  %v3554_v61 = vpack.c.bf16 %v2550_v52, %v2548_v63  ;;  %v3556_v13 = vpack.c.bf16 %v2555_v4, %v2553_v48  ;;  %v2588_v63 = vld [vmem:[#allocation5 + $0x340] sm:$0xff]  ;;  %v2593_v52 = vld [vmem:[#allocation5 + $0x368] sm:$0xff]  ;;  %v2595_v48 = vld [vmem:[#allocation5 + $0x378] sm:$0xff] }
 0x433   : > { %v3594_v4 = vpack.c.bf16 %v2590_v3, %v2588_v63 }
 0x434   : > { %3555 = vmatpush1.bf16.msra.mxu1 %v3554_v61  ;;  %v3596_v61 = vpack.c.bf16 %v2595_v48, %v2593_v52 }
 0x435   : > { %2287 = vmatmul.mubr.f32.gmra.mrb[66].mxu0 %v4661_v56  ;;  %v2552_v56 = vld [vmem:[#allocation5 + $0x220] sm:$0xff]  ;;  %3557 = vmatprep.subr.bf16.mxu1 %v3556_v13 }
 0x436   : > { %2292 = vmatprep.mubr.f32.mxu0 %v4667_v16  ;;  %v2557_v16 = vld [vmem:[#allocation5 + $0x248] sm:$0xff]  ;;  %v2592_v13 = vld [vmem:[#allocation5 + $0x360] sm:$0xff] }
 0x439   : > { %2293 = vmatmul.mubr.f32.gmra.mrb[68].mxu0 %v4665_v6  ;;  %v2559_v6 = vld [vmem:[#allocation5 + $0x258] sm:$0xff] }
 0x43a   : > { %2298 = vmatprep.mubr.f32.mxu0 %v4671_v22  ;;  %v3558_v22 = vpack.c.bf16 %v2554_v14, %v2552_v56  ;;  %v2594_v56 = vld [vmem:[#allocation5 + $0x370] sm:$0xff]  ;;  %v2597_v14 = vld [vmem:[#allocation5 + $0x388] sm:$0xff] }
 0x43c   : > { %3559 = vmatpush1.bf16.msra.mxu1 %v3558_v22 }
 0x43d   : > { %2299 = vmatmul.mubr.f32.gmra.mrb[70].mxu0 %v4669_v19  ;;  %v3560_v19 = vpack.c.bf16 %v2559_v6, %v2557_v16  ;;  %v2599_v16 = vld [vmem:[#allocation5 + $0x398] sm:$0xff]  ;;  %v3598_v6 = vpack.c.bf16 %v2594_v56, %v2592_v13  ;;  %v2358_v13 = vld [vmem:[%s4810_s7 + $0x8] sm:$0xff]  ;;  %v2359_v56 = vld [vmem:[%s4810_s7 + $0x10] sm:$0xff] }
 0x43e   : > { %2446 = vmatprep.mubr.f32.mxu0 %v4029_v58  ;;  %v3600_v22 = vpack.c.bf16 %v2599_v16, %v2597_v14  ;;  %v2360_v14 = vld [vmem:[%s4810_s7 + $0x18] sm:$0xff]  ;;  %v2361_v16 = vld [vmem:[%s4810_s7 + $0x20] sm:$0xff] }
 0x43f   : > { %3561 = vmatprep.subr.bf16.mxu1 %v3560_v19  ;;  %v2596_v19 = vld [vmem:[#allocation5 + $0x380] sm:$0xff] }
 0x440   : > { %3563 = vmatpush1.bf16.msra.mxu1 %v3562_v20  ;;  %v3602_v18 = vpack.c.bf16 %v2598_v15, %v2596_v19  ;;  %v3604_v20 = vpack.c.bf16 %v2603_v17, %v2601_v1  ;;  %v2611_v19 = vld [vmem:[#allocation5 + $0x3f8] sm:$0xff]  ;;  %v2608_v1 = vld [vmem:[#allocation5 + $0x3e0] sm:$0xff]  ;;  %v2610_v17 = vld [vmem:[#allocation5 + $0x3f0] sm:$0xff] }
 0x441   : > { %3565 = vmatprep.subr.bf16.mxu1 %v3564_v21  ;;  %v2600_v21 = vld [vmem:[#allocation5 + $0x3a0] sm:$0xff] }
 0x442   : > { %v3606_v25 = vpack.c.bf16 %v2602_v2, %v2600_v21  ;;  %v2486_v21 = vld [vmem:[#allocation5 + $0x18] sm:$0xff] }
 0x444   : > { %3567 = vmatpush1.bf16.msra.mxu1 %v3566_v26  ;;  %v3608_v26 = vpack.c.bf16 %v2607_v24, %v2605_v23 }
 0x445   : > { %3569 = vmatprep.subr.bf16.mxu1 %v3568_v27  ;;  %v2604_v27 = vld [vmem:[#allocation5 + $0x3c0] sm:$0xff] }
 0x446   : > { %v3610_v29 = vpack.c.bf16 %v2606_v28, %v2604_v27  ;;  %v2485_v27 = vld [vmem:[#allocation5 + $0x10] sm:$0xff]  ;;  %v2488_v28 = vld [vmem:[#allocation5 + $0x28] sm:$0xff] }
 0x448   : > { %3571 = vmatpush1.bf16.msra.mxu1 %v3570_v32  ;;  %v2322_v32 = vrot.slane %v2313_v30, %v4560_v0 }
 0x449   : > { %3573 = vmatprep.subr.bf16.mxu1 %v3572_v33 }
 0x44c   : > { %3575 = vmatpush1.bf16.msra.mxu1 %v3574_v38 }
 0x44d   : > { %3577 = vmatprep.subr.bf16.mxu1 %v3576_v39 }
 0x450   : > { %3579 = vmatpush1.bf16.msra.mxu1 %v3578_v8 }
 0x451   : > { %3581 = vmatprep.subr.bf16.mxu1 %v3580_v43 }
 0x454   : > { %3583 = vmatpush1.bf16.msra.mxu1 %v3582_v10 }
 0x455   : > { %3585 = vmatprep.subr.bf16.mxu1 %v3584_v47 }
 0x458   : > { %3587 = vmatpush1.bf16.msra.mxu1 %v3586_v12 }
 0x459   : > { %3589 = vmatprep.subr.bf16.mxu1 %v3588_v53 }
 0x45c   : > { %3591 = vmatpush1.bf16.msra.mxu1 %v3590_v60 }
 0x45d   : > { %3593 = vmatprep.subr.bf16.mxu1 %v3592_v11 }
 0x460   : > { %3595 = vmatpush1.bf16.msra.mxu1 %v3594_v4 }
 0x461   : > { %3597 = vmatprep.subr.bf16.mxu1 %v3596_v61  ;;  %v2357_v61 = vld [vmem:[%s4810_s7] sm:$0xff] }
 0x464   : > { %3599 = vmatpush1.bf16.msra.mxu1 %v3598_v6  ;;  %v2362_v6 = vld [vmem:[%s4810_s7 + $0x28] sm:$0xff] }
 0x465   : > { %3601 = vmatprep.subr.bf16.mxu1 %v3600_v22  ;;  %v2609_v22 = vld [vmem:[#allocation5 + $0x3e8] sm:$0xff] }
 0x466   : > { %v3612_v15 = vpack.c.bf16 %v2611_v19, %v2609_v22  ;;  %v2511_v19 = vld [vmem:[#allocation5 + $0xe0] sm:$0xff] }
 0x468   : > { %3603 = vmatpush1.bf16.msra.mxu1 %v3602_v18  ;;  %v3614_v18 = vpack.c.bf16 %v2610_v17, %v2608_v1  ;;  %v2516_v1 = vld [vmem:[#allocation5 + $0x108] sm:$0xff]  ;;  %v2518_v17 = vld [vmem:[#allocation5 + $0x118] sm:$0xff] }
 0x469   : > { %3605 = vmatprep.subr.bf16.mxu1 %v3604_v20  ;;  %v2484_v20 = vld [vmem:[#allocation5 + $0x8] sm:$0xff] }
 0x46a   : > { %v3616_v2 = vpack.c.bf16 %v2486_v21, %v2484_v20  ;;  %v3648_v20 = vpack.c.bf16 %v2518_v17, %v2516_v1  ;;  %v2515_v21 = vld [vmem:[#allocation5 + $0x100] sm:$0xff]  ;;  %v2774_v1 = vld [vmem:[#allocation5 + $0x438] sm:$0xff] }
 0x46c   : > { %3607 = vmatpush1.bf16.msra.mxu1 %v3606_v25 }
 0x46d   : > { %3609 = vmatprep.subr.bf16.mxu1 %v3608_v26  ;;  %v2483_v26 = vld [vmem:[#allocation5] sm:$0xff] }
 0x470   : > { %3611 = vmatpush1.bf16.msra.mxu1 %v3610_v29  ;;  %v2490_v29 = vld [vmem:[#allocation5 + $0x38] sm:$0xff] }
 0x471   : > { %3613 = vmatprep.subr.bf16.mxu1 %v3612_v15  ;;  %v2513_v15 = vld [vmem:[#allocation5 + $0xf0] sm:$0xff] }
 0x474   : > { %3615 = vmatpush1.bf16.msra.mxu1 %v3614_v18  ;;  %v3646_v18 = vpack.c.bf16 %v2513_v15, %v2511_v19  ;;  %v2769_v19 = vld [vmem:[#allocation5 + $0x410] sm:$0xff]  ;;  %v2772_v15 = vld [vmem:[#allocation5 + $0x428] sm:$0xff] }
 0x475   : > { %3617 = vmatprep.subr.bf16.mxu1 %v3616_v2  ;;  %v2517_v2 = vld [vmem:[#allocation5 + $0x110] sm:$0xff] }
 0x504   : > { %v2282_v33 = vpop.f32.mrb[64].mxu0 }
 0x505   : > { %v2325_v34 = vadd.f32 %v2318_v31, %v2282_v33  ;;  %v2284_v35 = vpop.f32.mrb[65].mxu0  ;;  %v3620_v33 = vpack.c.bf16 %v2490_v29, %v2488_v28  ;;  %v2519_v29 = vld [vmem:[#allocation5 + $0x120] sm:$0xff] }
 0x506   : > { %v2326_v36 = vadd.f32 %v2322_v32, %v2284_v35  ;;  %v2489_v35 = vld [vmem:[#allocation5 + $0x30] sm:$0xff] }
 0x507   : > { %v2341_v38 = vmul.f32 0.01, %v2325_v34  ;;  %vm2333_vm0 = vcmp.ge.f32.partialorder %v2325_v34, 0.0 }
 0x508   : > { %v2288_v37 = vpop.f32.mrb[66].mxu0  ;;  %v2342_v41 = vmul.f32 0.01, %v2326_v36  ;;  %vm2334_vm3 = vcmp.ge.f32.partialorder %v2326_v36, 0.0 }
 0x509   : > { %v2327_v39 = vadd.f32 %v2318_v31, %v2288_v37  ;;  %v2290_v40 = vpop.f32.mrb[67].mxu0  ;;  %v2349_v44 = vsel %vm2333_vm0, %v2325_v34, %v2341_v38  ;;  %v2487_v34 = vld [vmem:[#allocation5 + $0x20] sm:$0xff]  ;;  %v2494_v37 = vld [vmem:[#allocation5 + $0x58] sm:$0xff] }
 0x50a   : > { %v2328_v5 = vadd.f32 %v2322_v32, %v2290_v40  ;;  %v2350_v49 = vsel %vm2334_vm3, %v2326_v36, %v2342_v41  ;;  %v2492_v36 = vld [vmem:[#allocation5 + $0x48] sm:$0xff]  ;;  %v3622_v38 = vpack.c.bf16 %v2489_v35, %v2487_v34  ;;  %v2491_v41 = vld [vmem:[#allocation5 + $0x40] sm:$0xff] }
 0x50b   : > { %vm2335_vm4 = vcmp.ge.f32.partialorder %v2327_v39, 0.0  ;;  %v2343_v42 = vmul.f32 0.01, %v2327_v39  ;;  %v3624_v40 = vpack.c.bf16 %v2494_v37, %v2492_v36  ;;  %v2523_v35 = vld [vmem:[#allocation5 + $0x140] sm:$0xff]  ;;  %v2525_v36 = vld [vmem:[#allocation5 + $0x150] sm:$0xff]  ;;  %v2528_v37 = vld [vmem:[#allocation5 + $0x168] sm:$0xff] }
 0x50c   : > { %vm2336_vm5 = vcmp.ge.f32.partialorder %v2328_v5, 0.0  ;;  %v2344_v8 = vmul.f32 0.01, %v2328_v5  ;;  %v2294_v43 = vpop.f32.mrb[68].mxu0 }
 0x50d   : > { %v2351_v45 = vsel %vm2335_vm4, %v2327_v39, %v2343_v42  ;;  %v2329_v7 = vadd.f32 %v2318_v31, %v2294_v43  ;;  %v2296_v46 = vpop.f32.mrb[69].mxu0  ;;  %v2498_v43 = vld [vmem:[#allocation5 + $0x78] sm:$0xff] }
 0x50e   : > { %v3546_v10 = vpack.c.bf16 %v2351_v45, %v2349_v44  ;;  %v2330_v47 = vadd.f32 %v2322_v32, %v2296_v46  ;;  %v2352_v50 = vsel %vm2336_vm5, %v2328_v5, %v2344_v8  ;;  %v2493_v5 = vld [vmem:[#allocation5 + $0x50] sm:$0xff]  ;;  %v2496_v8 = vld [vmem:[#allocation5 + $0x68] sm:$0xff]  ;;  %v2495_v46 = vld [vmem:[#allocation5 + $0x60] sm:$0xff] }
 0x50f   : > { %v3544_v9 = vpack.c.bf16 %v2352_v50, %v2350_v49  ;;  %v2345_v12 = vmul.f32 0.01, %v2329_v7  ;;  %vm2337_vm6 = vcmp.ge.f32.partialorder %v2329_v7, 0.0  ;;  %v3626_v44 = vpack.c.bf16 %v2493_v5, %v2491_v41  ;;  %v2500_v49 = vld [vmem:[#allocation5 + $0x88] sm:$0xff]  ;;  %v2502_v50 = vld [vmem:[#allocation5 + $0x98] sm:$0xff]  ;;  %v2527_v41 = vld [vmem:[#allocation5 + $0x160] sm:$0xff] }
 0x510   : > { %v2300_v51 = vpop.f32.mrb[70].mxu0  ;;  %v2346_v55 = vmul.f32 0.01, %v2330_v47  ;;  %vm2338_vm7 = vcmp.ge.f32.partialorder %v2330_v47, 0.0  ;;  %v2529_v5 = vld [vmem:[#allocation5 + $0x170] sm:$0xff] }
 0x511   : > { %v2331_v53 = vadd.f32 %v2318_v31, %v2300_v51  ;;  %v2302_v54 = vpop.f32.mrb[71].mxu0  ;;  %3545 = vmatprep.subr.bf16.mxu0 %v3544_v9  ;;  %v2353_v11 = vsel %vm2337_vm6, %v2329_v7, %v2345_v12  ;;  %v3618_v31 = vpack.c.bf16 %v2485_v27, %v2483_v26  ;;  %v3628_v7 = vpack.c.bf16 %v2498_v43, %v2496_v8  ;;  %v2522_v26 = vld [vmem:[#allocation5 + $0x138] sm:$0xff] }
 0x512   : > { %v2332_v57 = vadd.f32 %v2322_v32, %v2302_v54  ;;  %3547 = vmatpush1.bf16.msra.mxu0 %v3546_v10  ;;  %v2354_v52 = vsel %vm2338_vm7, %v2330_v47, %v2346_v55  ;;  %v2497_v10 = vld [vmem:[#allocation5 + $0x70] sm:$0xff]  ;;  %v3632_v12 = vpack.c.bf16 %v2502_v50, %v2500_v49  ;;  %v3650_v27 = vpack.c.bf16 %v2517_v2, %v2515_v21  ;;  %v2534_v8 = vld [vmem:[#allocation5 + $0x198] sm:$0xff]  ;;  %v2776_v2 = vld [vmem:[#allocation5 + $0x448] sm:$0xff] }
 0x513   : > { %vm2339_vm8 = vcmp.ge.f32.partialorder %v2331_v53, 0.0  ;;  %v2347_v59 = vmul.f32 0.01, %v2331_v53  ;;  %v3630_v9 = vpack.c.bf16 %v2497_v10, %v2495_v46  ;;  %v2501_v54 = vld [vmem:[#allocation5 + $0x90] sm:$0xff]  ;;  %v3662_v43 = vpack.c.bf16 %v2529_v5, %v2527_v41  ;;  %v2536_v10 = vld [vmem:[#allocation5 + $0x1a8] sm:$0xff]  ;;  %v2538_v49 = vld [vmem:[#allocation5 + $0x1b8] sm:$0xff] }
 0x514   : > { %vm2340_vm9 = vcmp.ge.f32.partialorder %v2332_v57, 0.0  ;;  %v2348_v60 = vmul.f32 0.01, %v2332_v57  ;;  %v2533_v46 = vld [vmem:[#allocation5 + $0x190] sm:$0xff]  ;;  %v2790_v41 = vld [vmem:[#allocation5 + $0x4b8] sm:$0xff] }
 0x515   : > { %v2355_v63 = vsel %vm2339_vm8, %v2331_v53, %v2347_v59  ;;  %v2499_v53 = vld [vmem:[#allocation5 + $0x80] sm:$0xff]  ;;  %v2506_v59 = vld [vmem:[#allocation5 + $0xb8] sm:$0xff]  ;;  %v2773_v21 = vld [vmem:[#allocation5 + $0x430] sm:$0xff] }
 0x516   : > { %v3550_v3 = vpack.c.bf16 %v2355_v63, %v2353_v11  ;;  %v2356_v48 = vsel %vm2340_vm9, %v2332_v57, %v2348_v60  ;;  %v2504_v57 = vld [vmem:[#allocation5 + $0xa8] sm:$0xff]  ;;  %v3634_v60 = vpack.c.bf16 %v2501_v54, %v2499_v53  ;;  %v2503_v63 = vld [vmem:[#allocation5 + $0xa0] sm:$0xff]  ;;  %v2537_v53 = vld [vmem:[#allocation5 + $0x1b0] sm:$0xff] }
 0x517   : > { %v3548_v4 = vpack.c.bf16 %v2356_v48, %v2354_v52  ;;  %v3636_v11 = vpack.c.bf16 %v2506_v59, %v2504_v57  ;;  %v2508_v52 = vld [vmem:[#allocation5 + $0xc8] sm:$0xff]  ;;  %v2510_v48 = vld [vmem:[#allocation5 + $0xd8] sm:$0xff] }
 0x518   : > { %v2540_v54 = vld [vmem:[#allocation5 + $0x1c8] sm:$0xff]  ;;  %v2542_v57 = vld [vmem:[#allocation5 + $0x1d8] sm:$0xff] }
 0x519   : > { %3549 = vmatprep.subr.bf16.mxu0 %v3548_v4 }
 0x51a   : > { %3551 = vmatpush1.bf16.msra.mxu0 %v3550_v3  ;;  %v2505_v3 = vld [vmem:[#allocation5 + $0xb0] sm:$0xff] }
 0x51b   : > { %v3638_v4 = vpack.c.bf16 %v2505_v3, %v2503_v63  ;;  %v2541_v63 = vld [vmem:[#allocation5 + $0x1d0] sm:$0xff]  ;;  %v2544_v3 = vld [vmem:[#allocation5 + $0x1e8] sm:$0xff] }
 0x51d   : > { %3162 = vmatmul.mubr.msk.f32.vlgmr.msra.gmra.mrb[72].mxu0 %vm2363_vm10, %v2357_v61  ;;  %v3640_v61 = vpack.c.bf16 %v2510_v48, %v2508_v52  ;;  %v2546_v52 = vld [vmem:[#allocation5 + $0x1f8] sm:$0xff] }
 0x51e   : > { %2452 = vmatprep.mubr.f32.mxu0 %v4029_v58 }
 0x521   : > { %3163 = vmatmul.mubr.msk.f32.gmra.mrb[74].mxu0 %vm2363_vm10, %v2358_v13  ;;  %v2507_v13 = vld [vmem:[#allocation5 + $0xc0] sm:$0xff] }
 0x522   : > { %2458 = vmatprep.mubr.f32.mxu0 %v4029_v58 }
 0x525   : > { %3164 = vmatmul.mubr.msk.f32.gmra.mrb[76].mxu0 %vm2363_vm10, %v2359_v56  ;;  %v2509_v56 = vld [vmem:[#allocation5 + $0xd0] sm:$0xff] }
 0x526   : > { %2464 = vmatprep.mubr.f32.mxu0 %v4029_v58 }
 0x529   : > { %3165 = vmatmul.mubr.msk.f32.gmra.mrb[78].mxu0 %vm2363_vm10, %v2360_v14  ;;  %v2512_v14 = vld [vmem:[#allocation5 + $0xe8] sm:$0xff] }
 0x52a   : > { %2470 = vmatprep.mubr.f32.mxu0 %v4029_v58 }
 0x52d   : > { %3166 = vmatmul.mubr.msk.f32.gmra.mrb[80].mxu0 %vm2363_vm10, %v2361_v16  ;;  %v2514_v16 = vld [vmem:[#allocation5 + $0xf8] sm:$0xff] }
 0x52e   : > { %2476 = vmatprep.mubr.f32.mxu0 %v4029_v58  ;;  %v3644_v22 = vpack.c.bf16 %v2514_v16, %v2512_v14  ;;  %v2770_v14 = vld [vmem:[#allocation5 + $0x418] sm:$0xff] }
 0x531   : > { %3167 = vmatmul.mubr.msk.f32.gmra.mrb[82].mxu0 %vm2363_vm10, %v2362_v6  ;;  %v3642_v6 = vpack.c.bf16 %v2509_v56, %v2507_v13  ;;  %v2545_v13 = vld [vmem:[#allocation5 + $0x1f0] sm:$0xff]  ;;  %v2768_v56 = vld [vmem:[#allocation5 + $0x408] sm:$0xff] }
 0x5f0   : > { %v4723_v23 = vpop.f32.mrb[72].mxu0 }
 0x5f1   : > { %v2450_v58 = vpop.f32.mrb[73].mxu0 }
 0x5f4   : > { %v4725_v24 = vpop.f32.mrb[74].mxu0 }
 0x5f5   : > { %v4727_v25 = vpop.f32.mrb[75].mxu0 }
 0x5f8   : > { %v2460_v30 = vpop.f32.mrb[76].mxu0 }
 0x5f9   : > { %v2462_v32 = vpop.f32.mrb[77].mxu0 }
 0x5fa   : > { %2676 = vmatprep.mubr.f32.mxu1 %v2462_v32  ;;  %v2526_v32 = vld [vmem:[#allocation5 + $0x158] sm:$0xff] }
 0x5fb   : > { %2677 = vmatmul.mubr.f32.vlgmr.msra.gmra.mrb[16].mxu1 %v2460_v30  ;;  %v2521_v30 = vld [vmem:[#allocation5 + $0x130] sm:$0xff] }
 0x5fc   : > { %3619 = vmatpush1.bf16.msra.mxu1 %v3618_v31  ;;  %v2466_v39 = vpop.f32.mrb[78].mxu0  ;;  %v2524_v31 = vld [vmem:[#allocation5 + $0x148] sm:$0xff] }
 0x5fd   : > { %3621 = vmatprep.subr.bf16.mxu1 %v3620_v33  ;;  %v2468_v42 = vpop.f32.mrb[79].mxu0  ;;  %v3654_v33 = vpack.c.bf16 %v2521_v30, %v2519_v29  ;;  %v3656_v34 = vpack.c.bf16 %v2526_v32, %v2524_v31  ;;  %v2777_v29 = vld [vmem:[#allocation5 + $0x450] sm:$0xff]  ;;  %v2780_v30 = vld [vmem:[#allocation5 + $0x468] sm:$0xff]  ;;  %v2782_v31 = vld [vmem:[#allocation5 + $0x478] sm:$0xff] }
 0x5fe   : > { %2682 = vmatprep.mubr.f32.mxu1 %v2468_v42  ;;  %v2532_v42 = vld [vmem:[#allocation5 + $0x188] sm:$0xff] }
 0x5ff   : > { %2683 = vmatmul.mubr.f32.gmra.mrb[18].mxu1 %v2466_v39  ;;  %v3658_v39 = vpack.c.bf16 %v2525_v36, %v2523_v35  ;;  %v2784_v35 = vld [vmem:[#allocation5 + $0x488] sm:$0xff] }
 0x600   : > { %3623 = vmatpush1.bf16.msra.mxu1 %v3622_v38  ;;  %2753 = vmatprep.mubr.f32.mxu1 %v2450_v58  ;;  %v4729_v45 = vpop.f32.mrb[80].mxu0  ;;  %v2520_v58 = vld [vmem:[#allocation5 + $0x128] sm:$0xff]  ;;  %v2530_v38 = vld [vmem:[#allocation5 + $0x178] sm:$0xff] }
 0x601   : > { %3625 = vmatprep.subr.bf16.mxu1 %v3624_v40  ;;  %v4731_v47 = vpop.f32.mrb[81].mxu0  ;;  %v3652_v28 = vpack.c.bf16 %v2522_v26, %v2520_v58  ;;  %v3660_v40 = vpack.c.bf16 %v2530_v38, %v2528_v37  ;;  %v2778_v58 = vld [vmem:[#allocation5 + $0x458] sm:$0xff]  ;;  %v2783_v38 = vld [vmem:[#allocation5 + $0x480] sm:$0xff] }
 0x604   : > { %3627 = vmatpush1.bf16.msra.mxu1 %v3626_v44  ;;  %v4733_v51 = vpop.f32.mrb[82].mxu0  ;;  %v3664_v44 = vpack.c.bf16 %v2534_v8, %v2532_v42  ;;  %v2787_v42 = vld [vmem:[#allocation5 + $0x4a0] sm:$0xff]  ;;  %v2792_v8 = vld [vmem:[#allocation5 + $0x4c8] sm:$0xff] }
 0x605   : > { %3629 = vmatprep.subr.bf16.mxu1 %v3628_v7  ;;  %v4735_v55 = vpop.f32.mrb[83].mxu0  ;;  %v2531_v7 = vld [vmem:[#allocation5 + $0x180] sm:$0xff] }
 0x606   : > { %v3666_v50 = vpack.c.bf16 %v2533_v46, %v2531_v7  ;;  %v2791_v46 = vld [vmem:[#allocation5 + $0x4c0] sm:$0xff] }
 0x608   : > { %3631 = vmatpush1.bf16.msra.mxu1 %v3630_v9  ;;  %v3668_v9 = vpack.c.bf16 %v2538_v49, %v2536_v10  ;;  %v2793_v10 = vld [vmem:[#allocation5 + $0x4d0] sm:$0xff]  ;;  %v2796_v49 = vld [vmem:[#allocation5 + $0x4e8] sm:$0xff] }
 0x609   : > { %3633 = vmatprep.subr.bf16.mxu1 %v3632_v12  ;;  %v2535_v12 = vld [vmem:[#allocation5 + $0x1a0] sm:$0xff] }
 0x60a   : > { %v3670_v59 = vpack.c.bf16 %v2537_v53, %v2535_v12  ;;  %v2795_v53 = vld [vmem:[#allocation5 + $0x4e0] sm:$0xff] }
 0x60c   : > { %3635 = vmatpush1.bf16.msra.mxu1 %v3634_v60  ;;  %v3672_v60 = vpack.c.bf16 %v2542_v57, %v2540_v54  ;;  %v2797_v54 = vld [vmem:[#allocation5 + $0x4f0] sm:$0xff]  ;;  %v2800_v57 = vld [vmem:[#allocation5 + $0x508] sm:$0xff] }
 0x60d   : > { %3637 = vmatprep.subr.bf16.mxu1 %v3636_v11  ;;  %v2539_v11 = vld [vmem:[#allocation5 + $0x1c0] sm:$0xff] }
 0x60e   : > { %v3674_v48 = vpack.c.bf16 %v2541_v63, %v2539_v11  ;;  %v2799_v63 = vld [vmem:[#allocation5 + $0x500] sm:$0xff] }
 0x610   : > { %3639 = vmatpush1.bf16.msra.mxu1 %v3638_v4  ;;  %v3676_v4 = vpack.c.bf16 %v2546_v52, %v2544_v3  ;;  %v2801_v3 = vld [vmem:[#allocation5 + $0x510] sm:$0xff]  ;;  %v2804_v52 = vld [vmem:[#allocation5 + $0x528] sm:$0xff] }
 0x611   : > { %3641 = vmatprep.subr.bf16.mxu1 %v3640_v61  ;;  %v2543_v61 = vld [vmem:[#allocation5 + $0x1e0] sm:$0xff] }
 0x612   : > { %v3678_v16 = vpack.c.bf16 %v2545_v13, %v2543_v61  ;;  %v2803_v13 = vld [vmem:[#allocation5 + $0x520] sm:$0xff] }
 0x614   : > { %3643 = vmatpush1.bf16.msra.mxu1 %v3642_v6  ;;  %v3680_v6 = vpack.c.bf16 %v2770_v14, %v2768_v56  ;;  %v2805_v56 = vld [vmem:[#allocation5 + $0x530] sm:$0xff]  ;;  %v2808_v14 = vld [vmem:[#allocation5 + $0x548] sm:$0xff] }
 0x615   : > { %3645 = vmatprep.subr.bf16.mxu1 %v3644_v22  ;;  %v2767_v22 = vld [vmem:[#allocation5 + $0x400] sm:$0xff] }
 0x616   : > { %v3682_v17 = vpack.c.bf16 %v2769_v19, %v2767_v22  ;;  %v2807_v19 = vld [vmem:[#allocation5 + $0x540] sm:$0xff] }
 0x618   : > { %3647 = vmatpush1.bf16.msra.mxu1 %v3646_v18  ;;  %v3684_v18 = vpack.c.bf16 %v2774_v1, %v2772_v15  ;;  %v2809_v15 = vld [vmem:[#allocation5 + $0x550] sm:$0xff]  ;;  %v2812_v1 = vld [vmem:[#allocation5 + $0x568] sm:$0xff] }
 0x619   : > { %3649 = vmatprep.subr.bf16.mxu1 %v3648_v20  ;;  %v2771_v20 = vld [vmem:[#allocation5 + $0x420] sm:$0xff] }
 0x61a   : > { %v3686_v26 = vpack.c.bf16 %v2773_v21, %v2771_v20  ;;  %v2811_v21 = vld [vmem:[#allocation5 + $0x560] sm:$0xff] }
 0x61c   : > { %3651 = vmatpush1.bf16.msra.mxu1 %v3650_v27  ;;  %v3688_v27 = vpack.c.bf16 %v2778_v58, %v2776_v2  ;;  %v2813_v2 = vld [vmem:[#allocation5 + $0x570] sm:$0xff]  ;;  %v2816_v58 = vld [vmem:[#allocation5 + $0x588] sm:$0xff] }
 0x61d   : > { %3653 = vmatprep.subr.bf16.mxu1 %v3652_v28  ;;  %v2775_v28 = vld [vmem:[#allocation5 + $0x440] sm:$0xff] }
 0x61e   : > { %v3690_v32 = vpack.c.bf16 %v2777_v29, %v2775_v28  ;;  %v2815_v29 = vld [vmem:[#allocation5 + $0x580] sm:$0xff] }
 0x620   : > { %3655 = vmatpush1.bf16.msra.mxu1 %v3654_v33  ;;  %v3692_v33 = vpack.c.bf16 %v2782_v31, %v2780_v30  ;;  %v2817_v30 = vld [vmem:[#allocation5 + $0x590] sm:$0xff]  ;;  %v2820_v31 = vld [vmem:[#allocation5 + $0x5a8] sm:$0xff] }
 0x621   : > { %3657 = vmatprep.subr.bf16.mxu1 %v3656_v34  ;;  %v2779_v34 = vld [vmem:[#allocation5 + $0x460] sm:$0xff] }
 0x624   : > { %3659 = vmatpush1.bf16.msra.mxu1 %v3658_v39  ;;  %v2785_v39 = vld [vmem:[#allocation5 + $0x490] sm:$0xff] }
 0x625   : > { %3661 = vmatprep.subr.bf16.mxu1 %v3660_v40  ;;  %v2788_v40 = vld [vmem:[#allocation5 + $0x4a8] sm:$0xff] }
 0x626   : > { %v3700_v5 = vpack.c.bf16 %v2790_v41, %v2788_v40  ;;  %v2825_v40 = vld [vmem:[#allocation5 + $0x5d0] sm:$0xff]  ;;  %v2828_v41 = vld [vmem:[#allocation5 + $0x5e8] sm:$0xff] }
 0x628   : > { %3663 = vmatpush1.bf16.msra.mxu1 %v3662_v43  ;;  %v2794_v43 = vld [vmem:[#allocation5 + $0x4d8] sm:$0xff] }
 0x629   : > { %3665 = vmatprep.subr.bf16.mxu1 %v3664_v44  ;;  %v3704_v7 = vpack.c.bf16 %v2794_v43, %v2792_v8  ;;  %v2829_v8 = vld [vmem:[#allocation5 + $0x5f0] sm:$0xff] }
 0x62c   : > { %3667 = vmatpush1.bf16.msra.mxu1 %v3666_v50  ;;  %v2798_v50 = vld [vmem:[#allocation5 + $0x4f8] sm:$0xff] }
 0x62d   : > { %3669 = vmatprep.subr.bf16.mxu1 %v3668_v9  ;;  %v3706_v9 = vpack.c.bf16 %v2793_v10, %v2791_v46  ;;  %v3708_v12 = vpack.c.bf16 %v2798_v50, %v2796_v49 }
 0x630   : > { %3671 = vmatpush1.bf16.msra.mxu1 %v3670_v59  ;;  %v2802_v59 = vld [vmem:[#allocation5 + $0x518] sm:$0xff] }
 0x631   : > { %3673 = vmatprep.subr.bf16.mxu1 %v3672_v60  ;;  %v3710_v60 = vpack.c.bf16 %v2797_v54, %v2795_v53  ;;  %v3712_v11 = vpack.c.bf16 %v2802_v59, %v2800_v57 }
 0x634   : > { %3675 = vmatpush1.bf16.msra.mxu1 %v3674_v48  ;;  %v2806_v48 = vld [vmem:[#allocation5 + $0x538] sm:$0xff] }
 0x635   : > { %3677 = vmatprep.subr.bf16.mxu1 %v3676_v4  ;;  %v3714_v4 = vpack.c.bf16 %v2801_v3, %v2799_v63  ;;  %v3716_v61 = vpack.c.bf16 %v2806_v48, %v2804_v52 }
 0x638   : > { %3679 = vmatpush1.bf16.msra.mxu1 %v3678_v16  ;;  %v2810_v16 = vld [vmem:[#allocation5 + $0x558] sm:$0xff] }
 0x639   : > { %3681 = vmatprep.subr.bf16.mxu1 %v3680_v6  ;;  %v3718_v6 = vpack.c.bf16 %v2805_v56, %v2803_v13  ;;  %v3720_v22 = vpack.c.bf16 %v2810_v16, %v2808_v14 }
 0x63b   : > { %2754 = vmatmul.mubr.f32.vlgmr.msra.gmra.mrb[16].mxu1 %v4723_v23  ;;  %v2781_v23 = vld [vmem:[#allocation5 + $0x470] sm:$0xff] }
 0x63c   : > { %2759 = vmatprep.mubr.f32.mxu1 %v4727_v25  ;;  %3683 = vmatpush1.bf16.msra.mxu1 %v3682_v17  ;;  %v2786_v25 = vld [vmem:[#allocation5 + $0x498] sm:$0xff]  ;;  %v3694_v36 = vpack.c.bf16 %v2781_v23, %v2779_v34  ;;  %v2819_v23 = vld [vmem:[#allocation5 + $0x5a0] sm:$0xff] }
 0x63d   : > { %3685 = vmatprep.subr.bf16.mxu1 %v3684_v18  ;;  %v3696_v37 = vpack.c.bf16 %v2786_v25, %v2784_v35  ;;  %v2814_v17 = vld [vmem:[#allocation5 + $0x578] sm:$0xff]  ;;  %v3722_v18 = vpack.c.bf16 %v2809_v15, %v2807_v19  ;;  %v2821_v35 = vld [vmem:[#allocation5 + $0x5b0] sm:$0xff]  ;;  %v2824_v25 = vld [vmem:[#allocation5 + $0x5c8] sm:$0xff] }
 0x63e   : > { %v3724_v20 = vpack.c.bf16 %v2814_v17, %v2812_v1 }
 0x63f   : > { %2760 = vmatmul.mubr.f32.gmra.mrb[18].mxu1 %v4725_v24  ;;  %v3698_v24 = vpack.c.bf16 %v2785_v39, %v2783_v38  ;;  %v2823_v39 = vld [vmem:[#allocation5 + $0x5c0] sm:$0xff] }
 0x640   : > { %3687 = vmatpush1.bf16.msra.mxu1 %v3686_v26  ;;  %2895 = vmatprep.mubr.f32.mxu1 %v4731_v47  ;;  %v2789_v47 = vld [vmem:[#allocation5 + $0x4b0] sm:$0xff]  ;;  %v2818_v26 = vld [vmem:[#allocation5 + $0x598] sm:$0xff] }
 0x641   : > { %3689 = vmatprep.subr.bf16.mxu1 %v3688_v27  ;;  %v3702_v44 = vpack.c.bf16 %v2789_v47, %v2787_v42  ;;  %v3726_v27 = vpack.c.bf16 %v2813_v2, %v2811_v21  ;;  %v3728_v28 = vpack.c.bf16 %v2818_v26, %v2816_v58  ;;  %v2827_v47 = vld [vmem:[#allocation5 + $0x5e0] sm:$0xff] }
 0x642   : > { %v3742_v43 = vpack.c.bf16 %v2829_v8, %v2827_v47 }
 0x644   : > { %3691 = vmatpush1.bf16.msra.mxu1 %v3690_v32  ;;  %v2822_v32 = vld [vmem:[#allocation5 + $0x5b8] sm:$0xff] }
 0x645   : > { %3693 = vmatprep.subr.bf16.mxu1 %v3692_v33  ;;  %v3730_v33 = vpack.c.bf16 %v2817_v30, %v2815_v29  ;;  %v3732_v34 = vpack.c.bf16 %v2822_v32, %v2820_v31 }
 0x648   : > { %3695 = vmatpush1.bf16.msra.mxu1 %v3694_v36  ;;  %v2826_v36 = vld [vmem:[#allocation5 + $0x5d8] sm:$0xff] }
 0x649   : > { %3697 = vmatprep.subr.bf16.mxu1 %v3696_v37  ;;  %v3734_v37 = vpack.c.bf16 %v2821_v35, %v2819_v23  ;;  %v3736_v38 = vpack.c.bf16 %v2826_v36, %v2824_v25 }
 0x64c   : > { %3699 = vmatpush1.bf16.msra.mxu1 %v3698_v24  ;;  %v2830_v24 = vld [vmem:[#allocation5 + $0x5f8] sm:$0xff] }
 0x64d   : > { %3701 = vmatprep.subr.bf16.mxu1 %v3700_v5  ;;  %v3738_v5 = vpack.c.bf16 %v2825_v40, %v2823_v39  ;;  %v3740_v42 = vpack.c.bf16 %v2830_v24, %v2828_v41 }
 0x650   : > { %3703 = vmatpush1.bf16.msra.mxu1 %v3702_v44  ;;  %v2912_v44 = vld [vmem:[%s4812_s9] sm:$0x3] }
 0x651   : > { %3705 = vmatprep.subr.bf16.mxu1 %v3704_v7  ;;  %v2917_v7 = vrot.slane %v2912_v44, %v4555_v62  ;;  %v2921_v46 = vrot.slane %v2912_v44, %v4560_v0 }
 0x654   : > { %3707 = vmatpush1.bf16.msra.mxu1 %v3706_v9 }
 0x655   : > { %3709 = vmatprep.subr.bf16.mxu1 %v3708_v12 }
 0x658   : > { %3711 = vmatpush1.bf16.msra.mxu1 %v3710_v60 }
 0x659   : > { %3713 = vmatprep.subr.bf16.mxu1 %v3712_v11 }
 0x65c   : > { %3715 = vmatpush1.bf16.msra.mxu1 %v3714_v4 }
 0x65d   : > { %3717 = vmatprep.subr.bf16.mxu1 %v3716_v61 }
 0x660   : > { %3719 = vmatpush1.bf16.msra.mxu1 %v3718_v6 }
 0x661   : > { %3721 = vmatprep.subr.bf16.mxu1 %v3720_v22 }
 0x664   : > { %3723 = vmatpush1.bf16.msra.mxu1 %v3722_v18 }
 0x665   : > { %3725 = vmatprep.subr.bf16.mxu1 %v3724_v20 }
 0x668   : > { %3727 = vmatpush1.bf16.msra.mxu1 %v3726_v27 }
 0x669   : > { %3729 = vmatprep.subr.bf16.mxu1 %v3728_v28 }
 0x66c   : > { %3731 = vmatpush1.bf16.msra.mxu1 %v3730_v33 }
 0x66d   : > { %3733 = vmatprep.subr.bf16.mxu1 %v3732_v34 }
 0x670   : > { %3735 = vmatpush1.bf16.msra.mxu1 %v3734_v37 }
 0x671   : > { %3737 = vmatprep.subr.bf16.mxu1 %v3736_v38 }
 0x674   : > { %3739 = vmatpush1.bf16.msra.mxu1 %v3738_v5 }
 0x675   : > { %3741 = vmatprep.subr.bf16.mxu1 %v3740_v42 }
 0x678   : > { %3743 = vmatpush1.bf16.msra.mxu1 %v3742_v43 }
 0x67b   : > { %2896 = vmatmul.mubr.f32.vlgmr.msra.gmra.mrb[16].mxu1 %v4729_v45 }
 0x67c   : > { %2901 = vmatprep.mubr.f32.mxu1 %v4735_v55 }
 0x67f   : > { %2902 = vmatmul.mubr.f32.gmra.mrb[18].mxu1 %v4733_v51 }
 0x74e   : > { %v2897_v10 = vpop.f32.mrb[16].mxu1 }
 0x74f   : > { %v2924_v49 = vadd.f32 %v2917_v7, %v2897_v10  ;;  %v2899_v50 = vpop.f32.mrb[17].mxu1 }
 0x750   : > { %v2925_v45 = vadd.f32 %v2921_v46, %v2899_v50 }
 0x751   : > { %vm2928_vm11 = vcmp.ge.f32.partialorder %v2924_v49, 0.0  ;;  %v2932_v55 = vmul.f32 0.01, %v2924_v49 }
 0x752   : > { %vm2929_vm12 = vcmp.ge.f32.partialorder %v2925_v45, 0.0  ;;  %v2933_v51 = vmul.f32 0.01, %v2925_v45  ;;  %v2903_v9 = vpop.f32.mrb[18].mxu1 }
 0x753   : > { %v2936_v12 = vsel %vm2928_vm11, %v2924_v49, %v2932_v55  ;;  %v2926_v53 = vadd.f32 %v2917_v7, %v2903_v9  ;;  %v2905_v54 = vpop.f32.mrb[19].mxu1 }
 0x754   : > { %2940 = vst [vmem:[%s383_s11] sm:$0xff] %v2936_v12  ;;  %v2937_v62 = vsel %vm2929_vm12, %v2925_v45, %v2933_v51  ;;  %v2927_v0 = vadd.f32 %v2921_v46, %v2905_v54 }
 0x755   : > { %2941 = vst [vmem:[%s383_s11 + $0x8] sm:$0xff] %v2937_v62  ;;  %vm2930_vm13 = vcmp.ge.f32.partialorder %v2926_v53, 0.0  ;;  %v2934_v57 = vmul.f32 0.01, %v2926_v53 }
 0x756   : > { %vm2931_vm14 = vcmp.ge.f32.partialorder %v2927_v0, 0.0  ;;  %v2935_v59 = vmul.f32 0.01, %v2927_v0 }
 0x757   : > { %v2938_v60 = vsel %vm2930_vm13, %v2926_v53, %v2934_v57 }
 0x758   : > { %2942 = vst [vmem:[%s383_s11 + $0x10] sm:$0xff] %v2938_v60  ;;  %v2939_v11 = vsel %vm2931_vm14, %v2927_v0, %v2935_v59 }
 0x759   : > { %2943 = vst [vmem:[%s383_s11 + $0x18] sm:$0xff] %v2939_v11 }
 0x75a   : > { %3966 = shalt.err (!%p3963_p11)
}
 0x75b   : > { %s3967_s19 = scalar_lea.hbm %s4758_s21, 512  ;;  %s3971_s30 = scalar_lea.hbm %s4813_s10, 1024 }
 0x75c   : > { %p3968_p13 = scmp.ne.s32.totalorder %s4758_s21, %s3967_s19  ;;  %p3972_p6 = scmp.lt.u32.totalorder %s4758_s21, %s4813_s10 }
 0x75d   : > { %p3973_p9 = scmp.lt.u32.totalorder %s3971_s30, %s3967_s19  ;;  %p3975_p12 = scmp.lt.u32.totalorder %s3967_s19, %s4758_s21 }
 0x75e   : > { %p3969_p5 = pnand %p3968_p13, %p4834_p1 }
 0x75f   : > { %p3974_p10 = por %p3973_p9, %p3972_p6 }
 0x760   : > { %p3970_p0 = pneg %p3969_p5 }
 0x761   : > { %p3976_p2 = por %p3975_p12, %p3974_p10 }
 0x763   : > { %p3977_p3 = pnand %p3976_p2, %p3970_p0 }
 0x765   : > { %3980 = shalt.err (!%p3977_p3)
}
 0x766   : > { %s4031_s22 = smov 256   ;;  %s4032_s18 = smov 16  }
 0x767   : > { %3840 = dma.vmem_to_hbm [thread:$0]  (%p4834_p1), %s4753_s12, 512, %s4758_s21, %s4762_s17, %s4031_s22, %s4031_s22, %s4032_s18  }
 0x768 PF: > { %s4835_s20 = sld [smem:[#allocation14_spill]]  ;;  %p3857_p4 = scmp.ge.s32.totalorder %s4023_s16, 2 }
 0x769   : > { %s2974_s26 = sand.u32 1, %s4011_s13  }
 0x76a   : > { %s2975_s29 = scalar_lea.sflag [#allocation4], %s2974_s26 }
 0x76e   : > { %p4836_p7 = scmp.ne.s32.totalorder %s4835_s20, 0 }
 0x770   : > { %p3850_p8 = pnand %p3857_p4, %p4836_p7 }
 0x772   : > { %4006 = dma.done.wait (!%p3850_p8), %s2975_s29, 512  }
 0x773   : > { %4008 = vsyncadd (!%p3850_p8), %s2975_s29, 4294966784  ;;  %s4837_s16 = sld [smem:[#allocation12_spill]]  ;;  %s4838_s27 = sld [smem:[#allocation11_spill]] }
 0x774   : > { %s4839_s15 = sld [smem:[#allocation13_spill]]  ;;  %s4840_s13 = smov %s4015_s14 }
 0x779   : > { %p22_p11 = scmp.ge.s32.totalorder %s4837_s16, 4   ;;  %s4841_s14 = smov %s4838_s27 }
 0x77b   :  { %24 = sbr.rel (!%p22_p11) target bundleno = 5 (0x5), region = 112 }
 0x782   :  { %2980 = vsyncpa [#allocation3], 1 }
 0x783   :  { %2982 = vsyncpa [#allocation3 + $0x1], 1 }
 0x784   :  { %2983 = vsyncpa [#allocation6], 1 }
 0x785   :  { %2984 = vsyncpa [#allocation4], 1 }
 0x786   :  { %2986 = vsyncpa [#allocation4 + $0x1], 1 }

</bundles_post_ra>
